<compile_context>
chip_gen: v7x
topology: tpu7x:2x2x1
jax: 0.10.0
libtpu: 0.0.40
codegen_flags: <defaults>
</compile_context>

<pallas_src>
import functools

import jax
import jax.numpy as jnp
from jax.experimental import pallas as pl
from jax.experimental.pallas import tpu as pltpu

EPS = 1e-5  # nn.BatchNorm2d default eps

_PARALLEL = pltpu.CompilerParams(dimension_semantics=("parallel",))


# --------------------------------------------------------------------------- kernels
def _emit_output_and_stats(acc, out_ref, stats_refs):
    """Store the f32 accumulator as bf16 (or f32) output; optionally emit per-image
    per-channel sum / sum-of-squares partials computed from the f32 accumulator."""
    out_ref[0] = acc.astype(out_ref.dtype)
    if stats_refs:
        s_row = jnp.sum(acc, axis=0, keepdims=True)          # (1, C)
        ss_row = jnp.sum(acc * acc, axis=0, keepdims=True)   # (1, C)
        stats_refs[0][...] = jnp.concatenate([s_row, ss_row], axis=0)[None]  # (1,2,C)


def _make_pointwise_kernel():
    """1x1 conv: one per-image GEMM (input already spatially flattened)."""
    def kernel(x_ref, w_ref, out_ref, *stats_refs):
        acc = jnp.dot(x_ref[0], w_ref[...], preferred_element_type=jnp.float32)
        _emit_output_and_stats(acc, out_ref, stats_refs)
    return kernel


def _make_window_kernel(KH, KW, Ho, Wo):
    """KHxKW stride-1 VALID conv on one image: im2col is folded into the kernel as
    KH*KW static window slices of the VMEM-resident image, each a (Ho*Wo, Cin) x
    (Cin, Cout) MXU matmul accumulated in f32."""
    def kernel(x_ref, w_ref, out_ref, *stats_refs):
        ce = x_ref.shape[-1]
        acc = jnp.zeros((Ho * Wo, w_ref.shape[-1]), jnp.float32)
        for kh in range(KH):
            for kw in range(KW):
                win = x_ref[0, kh:kh + Ho, kw:kw + Wo, :]          # (Ho, Wo, Ce) bf16
                acc = acc + jnp.dot(win.reshape(Ho * Wo, ce), w_ref[kh, kw],
                                    preferred_element_type=jnp.float32)
        _emit_output_and_stats(acc, out_ref, stats_refs)
    return kernel


def _bn_relu_kernel(x_ref, scale_ref, shift_ref, out_ref):
    y = x_ref[...].astype(jnp.float32) * scale_ref[...] + shift_ref[...]
    out_ref[...] = jnp.maximum(y, 0.0).astype(out_ref.dtype)


def _bn_relu_res_kernel(x_ref, scale_ref, shift_ref, res_ref, out_ref):
    y = jnp.maximum(x_ref[...].astype(jnp.float32) * scale_ref[...] + shift_ref[...], 0.0)
    out_ref[...] = (y + res_ref[...].astype(jnp.float32)).astype(out_ref.dtype)


# --------------------------------------------------------------------------- pallas calls
def _conv_call(xe, we, *, compute_stats, out_dtype=jnp.bfloat16):
    """Stride-1 VALID conv, one grid step per image.
    we.ndim == 2: pointwise path, xe is (N, M, Ce), we is (Ce, Cout).
    we.ndim == 4: windowed path, xe is (N, He, We, Ce), we is (KH, KW, Ce, Cout).
    Returns (conv (N, M, Cout) out_dtype, channel_sum|None, channel_sumsq|None)."""
    if we.ndim == 2:
        N, M, Ce = xe.shape
        Cout = we.shape[-1]
        kernel = _make_pointwise_kernel()
        in_specs = [pl.BlockSpec((1, M, Ce), lambda n: (n, 0, 0)),
                    pl.BlockSpec((Ce, Cout), lambda n: (0, 0))]       # resident weights
        flops = 2 * N * M * Ce * Cout
    else:
        N, He, We_, Ce = xe.shape
        KH, KW, _, Cout = we.shape
        Ho, Wo = He - KH + 1, We_ - KW + 1
        M = Ho * Wo
        kernel = _make_window_kernel(KH, KW, Ho, Wo)
        in_specs = [pl.BlockSpec((1, He, We_, Ce), lambda n: (n, 0, 0, 0)),
                    pl.BlockSpec((KH, KW, Ce, Cout), lambda n: (0, 0, 0, 0))]
        flops = 2 * N * M * KH * KW * Ce * Cout

    out_spec = pl.BlockSpec((1, M, Cout), lambda n: (n, 0, 0))
    cost = pl.CostEstimate(
        flops=flops, transcendentals=0,
        bytes_accessed=xe.size * 2 + we.size * 2
        + N * M * Cout * jnp.dtype(out_dtype).itemsize)

    if compute_stats:
        conv, stats = pl.pallas_call(
            kernel,
            grid=(N,),
            in_specs=in_specs,
            out_specs=(out_spec, pl.BlockSpec((1, 2, Cout), lambda n: (n, 0, 0))),
            out_shape=(jax.ShapeDtypeStruct((N, M, Cout), out_dtype),
                       jax.ShapeDtypeStruct((N, 2, Cout), jnp.float32)),
            compiler_params=_PARALLEL,
            cost_estimate=cost,
        )(xe, we)
        totals = jnp.sum(stats, axis=0)            # tiny cross-image reduce in XLA
        return conv, totals[0], totals[1]

    conv = pl.pallas_call(
        kernel,
        grid=(N,),
        in_specs=in_specs,
        out_specs=out_spec,
        out_shape=jax.ShapeDtypeStruct((N, M, Cout), out_dtype),
        compiler_params=_PARALLEL,
        cost_estimate=cost,
    )(xe, we)
    return conv, None, None


def _bn_relu_call(conv, scale, shift, residual=None, out_dtype=jnp.bfloat16):
    """Fused y = relu(conv*scale + shift) [+ residual], per-image blocks, bf16 output."""
    N, M, C = conv.shape
    row_spec = pl.BlockSpec((1, M, C), lambda n: (n, 0, 0))
    vec_spec = pl.BlockSpec((1, 1, C), lambda n: (0, 0, 0))
    args = [conv, scale.reshape(1, 1, C).astype(jnp.float32),
            shift.reshape(1, 1, C).astype(jnp.float32)]
    in_specs = [row_spec, vec_spec, vec_spec]
    kernel = _bn_relu_kernel
    if residual is not None:                      # fused only where the module needs it
        args.append(residual)
        in_specs.append(row_spec)
        kernel = _bn_relu_res_kernel
    return pl.pallas_call(
        kernel,
        grid=(N,),
        in_specs=in_specs,
        out_specs=row_spec,
        out_shape=jax.ShapeDtypeStruct((N, M, C), out_dtype),
        compiler_params=_PARALLEL,
    )(*args)


# --------------------------------------------------------------------------- conv prep
def _prep_operands(x_nhwc, w_hwio, stride, padding):
    """Rewrite (conv, stride, padding) as an equivalent stride-1 VALID conv so the
    kernel only needs unit-stride static window slices.
      1x1 conv          -> pre-flattened (N, M, Cin) GEMM operand (strided subsample).
      KxK stride-1 conv -> spatially padded NHWC input.
      KxK stride-2 conv -> space-to-depth(2) of the padded input + remapped 2x2 weights.
    Everything is cast to bf16 here so padding / rearrange happen in a single bf16 pass.
    Returns (xe, we, (Ho, Wo))."""
    N, H, W, Cin = x_nhwc.shape
    KH, KW, _, Cout = w_hwio.shape
    xb = x_nhwc.astype(jnp.bfloat16)
    wb = w_hwio.astype(jnp.bfloat16)

    if KH == 1 and KW == 1:
        xs = xb[:, ::stride, ::stride, :]
        n, ho, wo, c = xs.shape
        return xs.reshape(n, ho * wo, c), wb.reshape(Cin, Cout), (ho, wo)

    if padding:
        xb = jnp.pad(xb, ((0, 0), (padding, padding), (padding, padding), (0, 0)))
    n, hp, wp, c = xb.shape

    if stride == 1:
        return xb, wb, (hp - KH + 1, wp - KW + 1)

    if stride == 2:
        assert hp % 2 == 0 and wp % 2 == 0, "stride-2 KxK conv needs even padded dims"
        # xd[n, i, j, (a, b, c)] = xp[n, 2i+a, 2j+b, c]
        xd = xb.reshape(n, hp // 2, 2, wp // 2, 2, c)
        xd = xd.transpose(0, 1, 3, 2, 4, 5).reshape(n, hp // 2, wp // 2, 4 * c)
        ke_h, ke_w = (KH + 1) // 2, (KW + 1) // 2
        w2 = jnp.zeros((ke_h, ke_w, 2, 2, Cin, Cout), wb.dtype)
        for a in range(ke_h):
            for al in range(2):
                kh = 2 * a + al
                if kh >= KH:
                    continue
                for b in range(ke_w):
                    for be in range(2):
                        kw = 2 * b + be
                        if kw >= KW:
                            continue
                        w2 = w2.at[a, b, al, be].set(wb[kh, kw])
        we = w2.reshape(ke_h, ke_w, 4 * Cin, Cout)
        return xd, we, (hp // 2 - ke_h + 1, wp // 2 - ke_w + 1)

    raise NotImplementedError("stride > 2 KxK conv")  # TODO(synk): general strides


# --------------------------------------------------------------------------- layers
def conv_in_relu_2d(x_nhwc, w, gamma, beta, *, stride, padding, residual=None):
    """ConvINReLU: Conv2d(no bias) -> BatchNorm2d(train-mode batch stats) -> ReLU,
    optionally fusing a post-ReLU residual add.  Input NHWC (any float dtype),
    output ((N, Ho*Wo, Cout) bf16, (Ho, Wo))."""
    xe, we, (Ho, Wo) = _prep_operands(x_nhwc, w, stride, padding)
    conv, s, ss = _conv_call(xe, we, compute_stats=True)
    M = x_nhwc.shape[0] * Ho * Wo
    mean = s / M
    var = jnp.maximum(ss / M - mean * mean, 0.0)
    # TODO(synk): E[x^2]-E[x]^2 in f32 can lose precision when |mean| >> std on real
    # workloads; switch to a two-pass / Welford reduction if that regime matters.
    scale = gamma * jax.lax.rsqrt(var + EPS)
    shift = beta - mean * scale
    out = _bn_relu_call(conv, scale, shift, residual)
    return out, (Ho, Wo)


def conv2d_plain(x_nhwc, w, *, stride, padding=0, out_dtype=jnp.float32):
    """Plain Conv2d (bias=False).  Used for Downsample.down (1x1, strided)."""
    xe, we, (Ho, Wo) = _prep_operands(x_nhwc, w, stride, padding)
    y, _, _ = _conv_call(xe, we, compute_stats=False, out_dtype=out_dtype)
    return y, (Ho, Wo)


# --------------------------------------------------------------------------- params
def _init_conv_bn(key, cin, cout, k):
    kw_, kg, kb = jax.random.split(key, 3)
    fan_in = cin * k * k
    w = jax.random.normal(kw_, (k, k, cin, cout), jnp.float32) / jnp.sqrt(fan_in)
    gamma = 1.0 + 0.1 * jax.random.normal(kg, (cout,), jnp.float32)
    beta = 0.1 * jax.random.normal(kb, (cout,), jnp.float32)
    return dict(w=w, gamma=gamma, beta=beta)


def init_downsample(key, cin, cout, stride=2):
    k1, k2, k3, k4 = jax.random.split(key, 4)
    p = dict(stride=stride,
             conv1=_init_conv_bn(k1, cin, cout, 3),
             conv2=_init_conv_bn(k2, cout, cout, 3),
             down=dict(w=jax.random.normal(k4, (1, 1, cout, cout), jnp.float32)
                       / jnp.sqrt(cout)))
    if stride != 1 or cin != cout:
        p["rescale"] = _init_conv_bn(k3, cin, cout, 1)
    return p


# --------------------------------------------------------------------------- forward
@functools.partial(jax.jit, static_argnames=("stride",))
def _downsample_impl(x_nchw, params, *, stride):
    x = jnp.transpose(x_nchw, (0, 2, 3, 1))                      # NCHW -> NHWC
    N, H, W, Cin = x.shape
    c1, c2 = params["conv1"], params["conv2"]

    h2d, (H1, W1) = conv_in_relu_2d(x, c1["w"], c1["gamma"], c1["beta"],
                                    stride=stride, padding=1)
    if "rescale" in params:
        rs = params["rescale"]
        id2d, _ = conv_in_relu_2d(x, rs["w"], rs["gamma"], rs["beta"],
                                  stride=stride, padding=0)
    else:
        id2d = x.astype(jnp.bfloat16).reshape(N, H * W, Cin)

    Cmid = h2d.shape[-1]
    h = h2d.reshape(N, H1, W1, Cmid)
    # conv2's epilogue fuses the post-ReLU residual add; the identity is consumed in its
    # native (N, Ho*Wo, C) bf16 layout (no slice / re-pad pass).
    r2d, _ = conv_in_relu_2d(h, c2["w"], c2["gamma"], c2["beta"],
                             stride=1, padding=1, residual=id2d)
    r = r2d.reshape(N, H1, W1, Cmid)

    y2d, (H2, W2) = conv2d_plain(r, params["down"]["w"], stride=stride, padding=0)
    y = y2d.reshape(N, H2, W2, -1)
    return jnp.transpose(y, (0, 3, 1, 2))                        # NHWC -> NCHW


def downsample_forward(x_nchw, p):
    params = {k: v for k, v in p.items() if k != "stride"}
    return _downsample_impl(x_nchw, params, stride=p["stride"])


# --------------------------------------------------------------------------- reference
# The reference mirrors the kernels' precision policy (bf16 matmul operands, bf16
# storage for activations between layers and for the pre-BN conv output, f32 compute /
# batch statistics), so the comparison isolates kernel-logic errors from bf16 rounding.
def _ref_conv(x, w, stride, padding):
    return jax.lax.conv_general_dilated(
        x.astype(jnp.bfloat16), w.astype(jnp.bfloat16),
        window_strides=(stride, stride),
        padding=[(padding, padding), (padding, padding)],
        dimension_numbers=("NHWC", "HWIO", "NHWC"),
        preferred_element_type=jnp.float32)


def _ref_layer(x, w, gamma, beta, stride, padding, residual=None):
    y = _ref_conv(x, w, stride, padding)                          # f32 accumulation
    mean = jnp.mean(y, axis=(0, 1, 2))
    var = jnp.mean(jnp.square(y - mean), axis=(0, 1, 2))
    scale = gamma * jax.lax.rsqrt(var + EPS)
    shift = beta - mean * scale
    yb = y.astype(jnp.bfloat16).astype(jnp.float32)               # bf16 conv-out storage
    out = jnp.maximum(yb * scale + shift, 0.0)
    if residual is not None:
        out = out + residual.astype(jnp.float32)
    return out.astype(jnp.bfloat16)                               # bf16 layer output


def ref_downsample(x_nchw, p):
    s = p["stride"]
    x = jnp.transpose(x_nchw, (0, 2, 3, 1)).astype(jnp.bfloat16)
    h = _ref_layer(x, p["conv1"]["w"], p["conv1"]["gamma"], p["conv1"]["beta"], s, 1)
    if "rescale" in p:
        identity = _ref_layer(x, p["rescale"]["w"], p["rescale"]["gamma"],
                              p["rescale"]["beta"], s, 0)
    else:
        identity = x
    r = _ref_layer(h, p["conv2"]["w"], p["conv2"]["gamma"], p["conv2"]["beta"], 1, 1,
                   residual=identity)
    y = _ref_conv(r, p["down"]["w"], s, 0)
    return jnp.transpose(y, (0, 3, 1, 2))


# --------------------------------------------------------------------------- main
if __name__ == "__main__":
    key = jax.random.PRNGKey(0)
    kx, kp = jax.random.split(key)

    N, Cin, Cout, H, W = 2, 4, 8, 16, 16
    x = jax.random.normal(kx, (N, Cin, H, W), jnp.float32)        # NCHW, like PyTorch
    params = init_downsample(kp, Cin, Cout, stride=2)

    out = jax.block_until_ready(downsample_forward(x, params))
    ref = jax.block_until_ready(ref_downsample(x, params))

    assert out.shape == (N, Cout, H // 4, W // 4), out.shape
    err = float(jnp.max(jnp.abs(out - ref)))
    # bf16 activation storage => differences up to ~1 bf16 ulp at rounding boundaries.
    if err < 2e-2:
        print("KERNEL_OK")
    else:
        raise SystemExit(f"mismatch: max abs err = {err}")
</pallas_src>

<mosaic_0001>
module attributes {stable_mosaic.version = 11 : i64} {
  func.func @kernel(%arg0: i32, %arg1: memref<1x9x9x16xbf16, #tpu.memory_space<vmem>>, %arg2: memref<2x2x16x8xbf16, #tpu.memory_space<vmem>>, %arg3: memref<1x64x8xbf16, #tpu.memory_space<vmem>>, %arg4: memref<1x2x8xf32, #tpu.memory_space<vmem>>) attributes {dimension_semantics = [#tpu.dimension_semantics<parallel>], iteration_bounds = array<i64: 2>, scalar_prefetch = 0 : i64, scratch_operands = 0 : i64, tpu.core_type = #tpu.core_type<tc>, window_params = [{transform_indices = @transform_0, window_bounds = array<i64: 1, 9, 9, 16>}, {pipeline_mode = #tpu.pipeline_mode<synchronous>, transform_indices = @transform_1, window_bounds = array<i64: 2, 2, 16, 8>}, {transform_indices = @transform_2, window_bounds = array<i64: 1, 64, 8>}, {transform_indices = @transform_3, window_bounds = array<i64: 1, 2, 8>}]} {
    %cst = arith.constant 0.000000e+00 : f32
    %0 = vector.broadcast %cst : f32 to vector<64x8xf32>
    %c0 = arith.constant 0 : index
    %c0_0 = arith.constant 0 : index
    %c0_1 = arith.constant 0 : index
    %c0_2 = arith.constant 0 : index
    %1 = vector.load %arg1[%c0, %c0_0, %c0_1, %c0_2] : memref<1x9x9x16xbf16, #tpu.memory_space<vmem>>, vector<1x8x8x16xbf16>
    %2 = vector.shape_cast %1 : vector<1x8x8x16xbf16> to vector<8x8x16xbf16>
    %3 = vector.shape_cast %2 : vector<8x8x16xbf16> to vector<64x16xbf16>
    %c0_3 = arith.constant 0 : index
    %c0_4 = arith.constant 0 : index
    %c0_5 = arith.constant 0 : index
    %c0_6 = arith.constant 0 : index
    %4 = vector.load %arg2[%c0_3, %c0_4, %c0_5, %c0_6] : memref<2x2x16x8xbf16, #tpu.memory_space<vmem>>, vector<1x1x16x8xbf16>
    %5 = vector.shape_cast %4 : vector<1x1x16x8xbf16> to vector<16x8xbf16>
    %cst_7 = arith.constant dense<0.000000e+00> : vector<64x8xf32>
    %6 = tpu.matmul %3, %5, %cst_7 {dimension_numbers = #tpu.dot_dimension_numbers<[1], [0], [0], [1], [0, 0, 1, 1], [], []>} : vector<64x16xbf16>, vector<16x8xbf16>, vector<64x8xf32> -> vector<64x8xf32>
    %7 = arith.addf %0, %6 : vector<64x8xf32>
    %c0_8 = arith.constant 0 : index
    %c0_9 = arith.constant 0 : index
    %c1 = arith.constant 1 : index
    %c0_10 = arith.constant 0 : index
    %8 = vector.load %arg1[%c0_8, %c0_9, %c1, %c0_10] : memref<1x9x9x16xbf16, #tpu.memory_space<vmem>>, vector<1x8x8x16xbf16>
    %9 = vector.shape_cast %8 : vector<1x8x8x16xbf16> to vector<8x8x16xbf16>
    %10 = vector.shape_cast %9 : vector<8x8x16xbf16> to vector<64x16xbf16>
    %c0_11 = arith.constant 0 : index
    %c1_12 = arith.constant 1 : index
    %c0_13 = arith.constant 0 : index
    %c0_14 = arith.constant 0 : index
    %11 = vector.load %arg2[%c0_11, %c1_12, %c0_13, %c0_14] : memref<2x2x16x8xbf16, #tpu.memory_space<vmem>>, vector<1x1x16x8xbf16>
    %12 = vector.shape_cast %11 : vector<1x1x16x8xbf16> to vector<16x8xbf16>
    %cst_15 = arith.constant dense<0.000000e+00> : vector<64x8xf32>
    %13 = tpu.matmul %10, %12, %cst_15 {dimension_numbers = #tpu.dot_dimension_numbers<[1], [0], [0], [1], [0, 0, 1, 1], [], []>} : vector<64x16xbf16>, vector<16x8xbf16>, vector<64x8xf32> -> vector<64x8xf32>
    %14 = arith.addf %7, %13 : vector<64x8xf32>
    %c0_16 = arith.constant 0 : index
    %c1_17 = arith.constant 1 : index
    %c0_18 = arith.constant 0 : index
    %c0_19 = arith.constant 0 : index
    %15 = vector.load %arg1[%c0_16, %c1_17, %c0_18, %c0_19] : memref<1x9x9x16xbf16, #tpu.memory_space<vmem>>, vector<1x8x8x16xbf16>
    %16 = vector.shape_cast %15 : vector<1x8x8x16xbf16> to vector<8x8x16xbf16>
    %17 = vector.shape_cast %16 : vector<8x8x16xbf16> to vector<64x16xbf16>
    %c1_20 = arith.constant 1 : index
    %c0_21 = arith.constant 0 : index
    %c0_22 = arith.constant 0 : index
    %c0_23 = arith.constant 0 : index
    %18 = vector.load %arg2[%c1_20, %c0_21, %c0_22, %c0_23] : memref<2x2x16x8xbf16, #tpu.memory_space<vmem>>, vector<1x1x16x8xbf16>
    %19 = vector.shape_cast %18 : vector<1x1x16x8xbf16> to vector<16x8xbf16>
    %cst_24 = arith.constant dense<0.000000e+00> : vector<64x8xf32>
    %20 = tpu.matmul %17, %19, %cst_24 {dimension_numbers = #tpu.dot_dimension_numbers<[1], [0], [0], [1], [0, 0, 1, 1], [], []>} : vector<64x16xbf16>, vector<16x8xbf16>, vector<64x8xf32> -> vector<64x8xf32>
    %21 = arith.addf %14, %20 : vector<64x8xf32>
    %c0_25 = arith.constant 0 : index
    %c1_26 = arith.constant 1 : index
    %c1_27 = arith.constant 1 : index
    %c0_28 = arith.constant 0 : index
    %22 = vector.load %arg1[%c0_25, %c1_26, %c1_27, %c0_28] : memref<1x9x9x16xbf16, #tpu.memory_space<vmem>>, vector<1x8x8x16xbf16>
    %23 = vector.shape_cast %22 : vector<1x8x8x16xbf16> to vector<8x8x16xbf16>
    %24 = vector.shape_cast %23 : vector<8x8x16xbf16> to vector<64x16xbf16>
    %c1_29 = arith.constant 1 : index
    %c1_30 = arith.constant 1 : index
    %c0_31 = arith.constant 0 : index
    %c0_32 = arith.constant 0 : index
    %25 = vector.load %arg2[%c1_29, %c1_30, %c0_31, %c0_32] : memref<2x2x16x8xbf16, #tpu.memory_space<vmem>>, vector<1x1x16x8xbf16>
    %26 = vector.shape_cast %25 : vector<1x1x16x8xbf16> to vector<16x8xbf16>
    %cst_33 = arith.constant dense<0.000000e+00> : vector<64x8xf32>
    %27 = tpu.matmul %24, %26, %cst_33 {dimension_numbers = #tpu.dot_dimension_numbers<[1], [0], [0], [1], [0, 0, 1, 1], [], []>} : vector<64x16xbf16>, vector<16x8xbf16>, vector<64x8xf32> -> vector<64x8xf32>
    %28 = arith.addf %21, %27 : vector<64x8xf32>
    %29 = arith.truncf %28 : vector<64x8xf32> to vector<64x8xbf16>
    %c0_34 = arith.constant 0 : index
    %c0_35 = arith.constant 0 : index
    %c0_36 = arith.constant 0 : index
    %30 = vector.load %arg3[%c0_34, %c0_35, %c0_36] : memref<1x64x8xbf16, #tpu.memory_space<vmem>>, vector<1x64x8xbf16>
    %31 = vector.shape_cast %30 : vector<1x64x8xbf16> to vector<64x8xbf16>
    %32 = vector.shape_cast %29 : vector<64x8xbf16> to vector<1x64x8xbf16>
    tpu.vector_store %arg3[%c0_34, %c0_35, %c0_36], %32 {strides = array<i32>} : memref<1x64x8xbf16, #tpu.memory_space<vmem>>, vector<1x64x8xbf16>,
    %cst_37 = arith.constant dense<0.000000e+00> : vector<8xf32>
    %33 = vector.multi_reduction <add>, %28, %cst_37 [0] : vector<64x8xf32> to vector<8xf32>
    %34 = vector.shape_cast %33 : vector<8xf32> to vector<1x8xf32>
    %35 = arith.mulf %28, %28 : vector<64x8xf32>
    %cst_38 = arith.constant dense<0.000000e+00> : vector<8xf32>
    %36 = vector.multi_reduction <add>, %35, %cst_38 [0] : vector<64x8xf32> to vector<8xf32>
    %37 = vector.shape_cast %36 : vector<8xf32> to vector<1x8xf32>
    %38 = tpu.concatenate %34, %37 in 0 : vector<1x8xf32>, vector<1x8xf32> -> vector<2x8xf32>
    %39 = vector.shape_cast %38 : vector<2x8xf32> to vector<1x2x8xf32>
    %c0_39 = arith.constant 0 : index
    %c0_40 = arith.constant 0 : index
    %c0_41 = arith.constant 0 : index
    %40 = vector.load %arg4[%c0_39, %c0_40, %c0_41] : memref<1x2x8xf32, #tpu.memory_space<vmem>>, vector<1x2x8xf32>
    tpu.vector_store %arg4[%c0_39, %c0_40, %c0_41], %39 {strides = array<i32>} : memref<1x2x8xf32, #tpu.memory_space<vmem>>, vector<1x2x8xf32>,
    return
  }
  func.func @transform_0(%arg0: i32) -> (i32, i32, i32, i32) {
    %c0_i32 = arith.constant 0 : i32
    %c0_i32_0 = arith.constant 0 : i32
    %c0_i32_1 = arith.constant 0 : i32
    %c0_i32_2 = arith.constant 0 : i32
    return %arg0, %c0_i32, %c0_i32_0, %c0_i32_1 : i32, i32, i32, i32
  }
  func.func @transform_1(%arg0: i32) -> (i32, i32, i32, i32) {
    %c0_i32 = arith.constant 0 : i32
    %c0_i32_0 = arith.constant 0 : i32
    %c0_i32_1 = arith.constant 0 : i32
    %c0_i32_2 = arith.constant 0 : i32
    %c0_i32_3 = arith.constant 0 : i32
    return %c0_i32, %c0_i32_0, %c0_i32_1, %c0_i32_2 : i32, i32, i32, i32
  }
  func.func @transform_2(%arg0: i32) -> (i32, i32, i32) {
    %c0_i32 = arith.constant 0 : i32
    %c0_i32_0 = arith.constant 0 : i32
    %c0_i32_1 = arith.constant 0 : i32
    return %arg0, %c0_i32, %c0_i32_0 : i32, i32, i32
  }
  func.func @transform_3(%arg0: i32) -> (i32, i32, i32) {
    %c0_i32 = arith.constant 0 : i32
    %c0_i32_0 = arith.constant 0 : i32
    %c0_i32_1 = arith.constant 0 : i32
    return %arg0, %c0_i32, %c0_i32_0 : i32, i32, i32
  }
}

module attributes {stable_mosaic.version = 11 : i64} {
  func.func @_bn_relu_kernel(%arg0: i32, %arg1: memref<1x64x8xbf16, #tpu.memory_space<vmem>>, %arg2: memref<1x1x8xf32, #tpu.memory_space<vmem>>, %arg3: memref<1x1x8xf32, #tpu.memory_space<vmem>>, %arg4: memref<1x64x8xbf16, #tpu.memory_space<vmem>>) attributes {dimension_semantics = [#tpu.dimension_semantics<parallel>], iteration_bounds = array<i64: 2>, scalar_prefetch = 0 : i64, scratch_operands = 0 : i64, tpu.core_type = #tpu.core_type<tc>, window_params = [{transform_indices = @transform_0, window_bounds = array<i64: 1, 64, 8>}, {pipeline_mode = #tpu.pipeline_mode<synchronous>, transform_indices = @transform_1, window_bounds = array<i64: 1, 1, 8>}, {pipeline_mode = #tpu.pipeline_mode<synchronous>, transform_indices = @transform_2, window_bounds = array<i64: 1, 1, 8>}, {transform_indices = @transform_3, window_bounds = array<i64: 1, 64, 8>}]} {
    %c0 = arith.constant 0 : index
    %c0_0 = arith.constant 0 : index
    %c0_1 = arith.constant 0 : index
    %0 = vector.load %arg1[%c0, %c0_0, %c0_1] : memref<1x64x8xbf16, #tpu.memory_space<vmem>>, vector<1x64x8xbf16>
    %1 = arith.extf %0 : vector<1x64x8xbf16> to vector<1x64x8xf32>
    %c0_2 = arith.constant 0 : index
    %c0_3 = arith.constant 0 : index
    %c0_4 = arith.constant 0 : index
    %2 = vector.load %arg2[%c0_2, %c0_3, %c0_4] : memref<1x1x8xf32, #tpu.memory_space<vmem>>, vector<1x1x8xf32>
    %3 = vector.broadcast %2 : vector<1x1x8xf32> to vector<1x64x8xf32>
    %4 = arith.mulf %1, %3 : vector<1x64x8xf32>
    %c0_5 = arith.constant 0 : index
    %c0_6 = arith.constant 0 : index
    %c0_7 = arith.constant 0 : index
    %5 = vector.load %arg3[%c0_5, %c0_6, %c0_7] : memref<1x1x8xf32, #tpu.memory_space<vmem>>, vector<1x1x8xf32>
    %6 = vector.broadcast %5 : vector<1x1x8xf32> to vector<1x64x8xf32>
    %7 = arith.addf %4, %6 : vector<1x64x8xf32>
    %cst = arith.constant 0.000000e+00 : f32
    %8 = vector.broadcast %cst : f32 to vector<1x64x8xf32>
    %9 = arith.maximumf %7, %8 : vector<1x64x8xf32>
    %10 = arith.truncf %9 : vector<1x64x8xf32> to vector<1x64x8xbf16>
    %c0_8 = arith.constant 0 : index
    %c0_9 = arith.constant 0 : index
    %c0_10 = arith.constant 0 : index
    %11 = vector.load %arg4[%c0_8, %c0_9, %c0_10] : memref<1x64x8xbf16, #tpu.memory_space<vmem>>, vector<1x64x8xbf16>
    tpu.vector_store %arg4[%c0_8, %c0_9, %c0_10], %10 {strides = array<i32>} : memref<1x64x8xbf16, #tpu.memory_space<vmem>>, vector<1x64x8xbf16>,
    return
  }
  func.func @transform_0(%arg0: i32) -> (i32, i32, i32) {
    %c0_i32 = arith.constant 0 : i32
    %c0_i32_0 = arith.constant 0 : i32
    %c0_i32_1 = arith.constant 0 : i32
    return %arg0, %c0_i32, %c0_i32_0 : i32, i32, i32
  }
  func.func @transform_1(%arg0: i32) -> (i32, i32, i32) {
    %c0_i32 = arith.constant 0 : i32
    %c0_i32_0 = arith.constant 0 : i32
    %c0_i32_1 = arith.constant 0 : i32
    %c0_i32_2 = arith.constant 0 : i32
    return %c0_i32, %c0_i32_0, %c0_i32_1 : i32, i32, i32
  }
  func.func @transform_2(%arg0: i32) -> (i32, i32, i32) {
    %c0_i32 = arith.constant 0 : i32
    %c0_i32_0 = arith.constant 0 : i32
    %c0_i32_1 = arith.constant 0 : i32
    %c0_i32_2 = arith.constant 0 : i32
    return %c0_i32, %c0_i32_0, %c0_i32_1 : i32, i32, i32
  }
  func.func @transform_3(%arg0: i32) -> (i32, i32, i32) {
    %c0_i32 = arith.constant 0 : i32
    %c0_i32_0 = arith.constant 0 : i32
    %c0_i32_1 = arith.constant 0 : i32
    return %arg0, %c0_i32, %c0_i32_0 : i32, i32, i32
  }
}

module attributes {stable_mosaic.version = 11 : i64} {
  func.func @kernel(%arg0: i32, %arg1: memref<1x10x10x8xbf16, #tpu.memory_space<vmem>>, %arg2: memref<3x3x8x8xbf16, #tpu.memory_space<vmem>>, %arg3: memref<1x64x8xbf16, #tpu.memory_space<vmem>>, %arg4: memref<1x2x8xf32, #tpu.memory_space<vmem>>) attributes {dimension_semantics = [#tpu.dimension_semantics<parallel>], iteration_bounds = array<i64: 2>, scalar_prefetch = 0 : i64, scratch_operands = 0 : i64, tpu.core_type = #tpu.core_type<tc>, window_params = [{transform_indices = @transform_0, window_bounds = array<i64: 1, 10, 10, 8>}, {pipeline_mode = #tpu.pipeline_mode<synchronous>, transform_indices = @transform_1, window_bounds = array<i64: 3, 3, 8, 8>}, {transform_indices = @transform_2, window_bounds = array<i64: 1, 64, 8>}, {transform_indices = @transform_3, window_bounds = array<i64: 1, 2, 8>}]} {
    %cst = arith.constant 0.000000e+00 : f32
    %0 = vector.broadcast %cst : f32 to vector<64x8xf32>
    %c0 = arith.constant 0 : index
    %c0_0 = arith.constant 0 : index
    %c0_1 = arith.constant 0 : index
    %c0_2 = arith.constant 0 : index
    %1 = vector.load %arg1[%c0, %c0_0, %c0_1, %c0_2] : memref<1x10x10x8xbf16, #tpu.memory_space<vmem>>, vector<1x8x8x8xbf16>
    %2 = vector.shape_cast %1 : vector<1x8x8x8xbf16> to vector<8x8x8xbf16>
    %3 = vector.shape_cast %2 : vector<8x8x8xbf16> to vector<64x8xbf16>
    %c0_3 = arith.constant 0 : index
    %c0_4 = arith.constant 0 : index
    %c0_5 = arith.constant 0 : index
    %c0_6 = arith.constant 0 : index
    %4 = vector.load %arg2[%c0_3, %c0_4, %c0_5, %c0_6] : memref<3x3x8x8xbf16, #tpu.memory_space<vmem>>, vector<1x1x8x8xbf16>
    %5 = vector.shape_cast %4 : vector<1x1x8x8xbf16> to vector<8x8xbf16>
    %cst_7 = arith.constant dense<0.000000e+00> : vector<64x8xf32>
    %6 = tpu.matmul %3, %5, %cst_7 {dimension_numbers = #tpu.dot_dimension_numbers<[1], [0], [0], [1], [0, 0, 1, 1], [], []>} : vector<64x8xbf16>, vector<8x8xbf16>, vector<64x8xf32> -> vector<64x8xf32>
    %7 = arith.addf %0, %6 : vector<64x8xf32>
    %c0_8 = arith.constant 0 : index
    %c0_9 = arith.constant 0 : index
    %c1 = arith.constant 1 : index
    %c0_10 = arith.constant 0 : index
    %8 = vector.load %arg1[%c0_8, %c0_9, %c1, %c0_10] : memref<1x10x10x8xbf16, #tpu.memory_space<vmem>>, vector<1x8x8x8xbf16>
    %9 = vector.shape_cast %8 : vector<1x8x8x8xbf16> to vector<8x8x8xbf16>
    %10 = vector.shape_cast %9 : vector<8x8x8xbf16> to vector<64x8xbf16>
    %c0_11 = arith.constant 0 : index
    %c1_12 = arith.constant 1 : index
    %c0_13 = arith.constant 0 : index
    %c0_14 = arith.constant 0 : index
    %11 = vector.load %arg2[%c0_11, %c1_12, %c0_13, %c0_14] : memref<3x3x8x8xbf16, #tpu.memory_space<vmem>>, vector<1x1x8x8xbf16>
    %12 = vector.shape_cast %11 : vector<1x1x8x8xbf16> to vector<8x8xbf16>
    %cst_15 = arith.constant dense<0.000000e+00> : vector<64x8xf32>
    %13 = tpu.matmul %10, %12, %cst_15 {dimension_numbers = #tpu.dot_dimension_numbers<[1], [0], [0], [1], [0, 0, 1, 1], [], []>} : vector<64x8xbf16>, vector<8x8xbf16>, vector<64x8xf32> -> vector<64x8xf32>
    %14 = arith.addf %7, %13 : vector<64x8xf32>
    %c0_16 = arith.constant 0 : index
    %c0_17 = arith.constant 0 : index
    %c2 = arith.constant 2 : index
    %c0_18 = arith.constant 0 : index
    %15 = vector.load %arg1[%c0_16, %c0_17, %c2, %c0_18] : memref<1x10x10x8xbf16, #tpu.memory_space<vmem>>, vector<1x8x8x8xbf16>
    %16 = vector.shape_cast %15 : vector<1x8x8x8xbf16> to vector<8x8x8xbf16>
    %17 = vector.shape_cast %16 : vector<8x8x8xbf16> to vector<64x8xbf16>
    %c0_19 = arith.constant 0 : index
    %c2_20 = arith.constant 2 : index
    %c0_21 = arith.constant 0 : index
    %c0_22 = arith.constant 0 : index
    %18 = vector.load %arg2[%c0_19, %c2_20, %c0_21, %c0_22] : memref<3x3x8x8xbf16, #tpu.memory_space<vmem>>, vector<1x1x8x8xbf16>
    %19 = vector.shape_cast %18 : vector<1x1x8x8xbf16> to vector<8x8xbf16>
    %cst_23 = arith.constant dense<0.000000e+00> : vector<64x8xf32>
    %20 = tpu.matmul %17, %19, %cst_23 {dimension_numbers = #tpu.dot_dimension_numbers<[1], [0], [0], [1], [0, 0, 1, 1], [], []>} : vector<64x8xbf16>, vector<8x8xbf16>, vector<64x8xf32> -> vector<64x8xf32>
    %21 = arith.addf %14, %20 : vector<64x8xf32>
    %c0_24 = arith.constant 0 : index
    %c1_25 = arith.constant 1 : index
    %c0_26 = arith.constant 0 : index
    %c0_27 = arith.constant 0 : index
    %22 = vector.load %arg1[%c0_24, %c1_25, %c0_26, %c0_27] : memref<1x10x10x8xbf16, #tpu.memory_space<vmem>>, vector<1x8x8x8xbf16>
    %23 = vector.shape_cast %22 : vector<1x8x8x8xbf16> to vector<8x8x8xbf16>
    %24 = vector.shape_cast %23 : vector<8x8x8xbf16> to vector<64x8xbf16>
    %c1_28 = arith.constant 1 : index
    %c0_29 = arith.constant 0 : index
    %c0_30 = arith.constant 0 : index
    %c0_31 = arith.constant 0 : index
    %25 = vector.load %arg2[%c1_28, %c0_29, %c0_30, %c0_31] : memref<3x3x8x8xbf16, #tpu.memory_space<vmem>>, vector<1x1x8x8xbf16>
    %26 = vector.shape_cast %25 : vector<1x1x8x8xbf16> to vector<8x8xbf16>
    %cst_32 = arith.constant dense<0.000000e+00> : vector<64x8xf32>
    %27 = tpu.matmul %24, %26, %cst_32 {dimension_numbers = #tpu.dot_dimension_numbers<[1], [0], [0], [1], [0, 0, 1, 1], [], []>} : vector<64x8xbf16>, vector<8x8xbf16>, vector<64x8xf32> -> vector<64x8xf32>
    %28 = arith.addf %21, %27 : vector<64x8xf32>
    %c0_33 = arith.constant 0 : index
    %c1_34 = arith.constant 1 : index
    %c1_35 = arith.constant 1 : index
    %c0_36 = arith.constant 0 : index
    %29 = vector.load %arg1[%c0_33, %c1_34, %c1_35, %c0_36] : memref<1x10x10x8xbf16, #tpu.memory_space<vmem>>, vector<1x8x8x8xbf16>
    %30 = vector.shape_cast %29 : vector<1x8x8x8xbf16> to vector<8x8x8xbf16>
    %31 = vector.shape_cast %30 : vector<8x8x8xbf16> to vector<64x8xbf16>
    %c1_37 = arith.constant 1 : index
    %c1_38 = arith.constant 1 : index
    %c0_39 = arith.constant 0 : index
    %c0_40 = arith.constant 0 : index
    %32 = vector.load %arg2[%c1_37, %c1_38, %c0_39, %c0_40] : memref<3x3x8x8xbf16, #tpu.memory_space<vmem>>, vector<1x1x8x8xbf16>
    %33 = vector.shape_cast %32 : vector<1x1x8x8xbf16> to vector<8x8xbf16>
    %cst_41 = arith.constant dense<0.000000e+00> : vector<64x8xf32>
    %34 = tpu.matmul %31, %33, %cst_41 {dimension_numbers = #tpu.dot_dimension_numbers<[1], [0], [0], [1], [0, 0, 1, 1], [], []>} : vector<64x8xbf16>, vector<8x8xbf16>, vector<64x8xf32> -> vector<64x8xf32>
    %35 = arith.addf %28, %34 : vector<64x8xf32>
    %c0_42 = arith.constant 0 : index
    %c1_43 = arith.constant 1 : index
    %c2_44 = arith.constant 2 : index
    %c0_45 = arith.constant 0 : index
    %36 = vector.load %arg1[%c0_42, %c1_43, %c2_44, %c0_45] : memref<1x10x10x8xbf16, #tpu.memory_space<vmem>>, vector<1x8x8x8xbf16>
    %37 = vector.shape_cast %36 : vector<1x8x8x8xbf16> to vector<8x8x8xbf16>
    %38 = vector.shape_cast %37 : vector<8x8x8xbf16> to vector<64x8xbf16>
    %c1_46 = arith.constant 1 : index
    %c2_47 = arith.constant 2 : index
    %c0_48 = arith.constant 0 : index
    %c0_49 = arith.constant 0 : index
    %39 = vector.load %arg2[%c1_46, %c2_47, %c0_48, %c0_49] : memref<3x3x8x8xbf16, #tpu.memory_space<vmem>>, vector<1x1x8x8xbf16>
    %40 = vector.shape_cast %39 : vector<1x1x8x8xbf16> to vector<8x8xbf16>
    %cst_50 = arith.constant dense<0.000000e+00> : vector<64x8xf32>
    %41 = tpu.matmul %38, %40, %cst_50 {dimension_numbers = #tpu.dot_dimension_numbers<[1], [0], [0], [1], [0, 0, 1, 1], [], []>} : vector<64x8xbf16>, vector<8x8xbf16>, vector<64x8xf32> -> vector<64x8xf32>
    %42 = arith.addf %35, %41 : vector<64x8xf32>
    %c0_51 = arith.constant 0 : index
    %c2_52 = arith.constant 2 : index
    %c0_53 = arith.constant 0 : index
    %c0_54 = arith.constant 0 : index
    %43 = vector.load %arg1[%c0_51, %c2_52, %c0_53, %c0_54] : memref<1x10x10x8xbf16, #tpu.memory_space<vmem>>, vector<1x8x8x8xbf16>
    %44 = vector.shape_cast %43 : vector<1x8x8x8xbf16> to vector<8x8x8xbf16>
    %45 = vector.shape_cast %44 : vector<8x8x8xbf16> to vector<64x8xbf16>
    %c2_55 = arith.constant 2 : index
    %c0_56 = arith.constant 0 : index
    %c0_57 = arith.constant 0 : index
    %c0_58 = arith.constant 0 : index
    %46 = vector.load %arg2[%c2_55, %c0_56, %c0_57, %c0_58] : memref<3x3x8x8xbf16, #tpu.memory_space<vmem>>, vector<1x1x8x8xbf16>
    %47 = vector.shape_cast %46 : vector<1x1x8x8xbf16> to vector<8x8xbf16>
    %cst_59 = arith.constant dense<0.000000e+00> : vector<64x8xf32>
    %48 = tpu.matmul %45, %47, %cst_59 {dimension_numbers = #tpu.dot_dimension_numbers<[1], [0], [0], [1], [0, 0, 1, 1], [], []>} : vector<64x8xbf16>, vector<8x8xbf16>, vector<64x8xf32> -> vector<64x8xf32>
    %49 = arith.addf %42, %48 : vector<64x8xf32>
    %c0_60 = arith.constant 0 : index
    %c2_61 = arith.constant 2 : index
    %c1_62 = arith.constant 1 : index
    %c0_63 = arith.constant 0 : index
    %50 = vector.load %arg1[%c0_60, %c2_61, %c1_62, %c0_63] : memref<1x10x10x8xbf16, #tpu.memory_space<vmem>>, vector<1x8x8x8xbf16>
    %51 = vector.shape_cast %50 : vector<1x8x8x8xbf16> to vector<8x8x8xbf16>
    %52 = vector.shape_cast %51 : vector<8x8x8xbf16> to vector<64x8xbf16>
    %c2_64 = arith.constant 2 : index
    %c1_65 = arith.constant 1 : index
    %c0_66 = arith.constant 0 : index
    %c0_67 = arith.constant 0 : index
    %53 = vector.load %arg2[%c2_64, %c1_65, %c0_66, %c0_67] : memref<3x3x8x8xbf16, #tpu.memory_space<vmem>>, vector<1x1x8x8xbf16>
    %54 = vector.shape_cast %53 : vector<1x1x8x8xbf16> to vector<8x8xbf16>
    %cst_68 = arith.constant dense<0.000000e+00> : vector<64x8xf32>
    %55 = tpu.matmul %52, %54, %cst_68 {dimension_numbers = #tpu.dot_dimension_numbers<[1], [0], [0], [1], [0, 0, 1, 1], [], []>} : vector<64x8xbf16>, vector<8x8xbf16>, vector<64x8xf32> -> vector<64x8xf32>
    %56 = arith.addf %49, %55 : vector<64x8xf32>
    %c0_69 = arith.constant 0 : index
    %c2_70 = arith.constant 2 : index
    %c2_71 = arith.constant 2 : index
    %c0_72 = arith.constant 0 : index
    %57 = vector.load %arg1[%c0_69, %c2_70, %c2_71, %c0_72] : memref<1x10x10x8xbf16, #tpu.memory_space<vmem>>, vector<1x8x8x8xbf16>
    %58 = vector.shape_cast %57 : vector<1x8x8x8xbf16> to vector<8x8x8xbf16>
    %59 = vector.shape_cast %58 : vector<8x8x8xbf16> to vector<64x8xbf16>
    %c2_73 = arith.constant 2 : index
    %c2_74 = arith.constant 2 : index
    %c0_75 = arith.constant 0 : index
    %c0_76 = arith.constant 0 : index
    %60 = vector.load %arg2[%c2_73, %c2_74, %c0_75, %c0_76] : memref<3x3x8x8xbf16, #tpu.memory_space<vmem>>, vector<1x1x8x8xbf16>
    %61 = vector.shape_cast %60 : vector<1x1x8x8xbf16> to vector<8x8xbf16>
    %cst_77 = arith.constant dense<0.000000e+00> : vector<64x8xf32>
    %62 = tpu.matmul %59, %61, %cst_77 {dimension_numbers = #tpu.dot_dimension_numbers<[1], [0], [0], [1], [0, 0, 1, 1], [], []>} : vector<64x8xbf16>, vector<8x8xbf16>, vector<64x8xf32> -> vector<64x8xf32>
    %63 = arith.addf %56, %62 : vector<64x8xf32>
    %64 = arith.truncf %63 : vector<64x8xf32> to vector<64x8xbf16>
    %c0_78 = arith.constant 0 : index
    %c0_79 = arith.constant 0 : index
    %c0_80 = arith.constant 0 : index
    %65 = vector.load %arg3[%c0_78, %c0_79, %c0_80] : memref<1x64x8xbf16, #tpu.memory_space<vmem>>, vector<1x64x8xbf16>
    %66 = vector.shape_cast %65 : vector<1x64x8xbf16> to vector<64x8xbf16>
    %67 = vector.shape_cast %64 : vector<64x8xbf16> to vector<1x64x8xbf16>
    tpu.vector_store %arg3[%c0_78, %c0_79, %c0_80], %67 {strides = array<i32>} : memref<1x64x8xbf16, #tpu.memory_space<vmem>>, vector<1x64x8xbf16>,
    %cst_81 = arith.constant dense<0.000000e+00> : vector<8xf32>
    %68 = vector.multi_reduction <add>, %63, %cst_81 [0] : vector<64x8xf32> to vector<8xf32>
    %69 = vector.shape_cast %68 : vector<8xf32> to vector<1x8xf32>
    %70 = arith.mulf %63, %63 : vector<64x8xf32>
    %cst_82 = arith.constant dense<0.000000e+00> : vector<8xf32>
    %71 = vector.multi_reduction <add>, %70, %cst_82 [0] : vector<64x8xf32> to vector<8xf32>
    %72 = vector.shape_cast %71 : vector<8xf32> to vector<1x8xf32>
    %73 = tpu.concatenate %69, %72 in 0 : vector<1x8xf32>, vector<1x8xf32> -> vector<2x8xf32>
    %74 = vector.shape_cast %73 : vector<2x8xf32> to vector<1x2x8xf32>
    %c0_83 = arith.constant 0 : index
    %c0_84 = arith.constant 0 : index
    %c0_85 = arith.constant 0 : index
    %75 = vector.load %arg4[%c0_83, %c0_84, %c0_85] : memref<1x2x8xf32, #tpu.memory_space<vmem>>, vector<1x2x8xf32>
    tpu.vector_store %arg4[%c0_83, %c0_84, %c0_85], %74 {strides = array<i32>} : memref<1x2x8xf32, #tpu.memory_space<vmem>>, vector<1x2x8xf32>,
    return
  }
  func.func @transform_0(%arg0: i32) -> (i32, i32, i32, i32) {
    %c0_i32 = arith.constant 0 : i32
    %c0_i32_0 = arith.constant 0 : i32
    %c0_i32_1 = arith.constant 0 : i32
    %c0_i32_2 = arith.constant 0 : i32
    return %arg0, %c0_i32, %c0_i32_0, %c0_i32_1 : i32, i32, i32, i32
  }
  func.func @transform_1(%arg0: i32) -> (i32, i32, i32, i32) {
    %c0_i32 = arith.constant 0 : i32
    %c0_i32_0 = arith.constant 0 : i32
    %c0_i32_1 = arith.constant 0 : i32
    %c0_i32_2 = arith.constant 0 : i32
    %c0_i32_3 = arith.constant 0 : i32
    return %c0_i32, %c0_i32_0, %c0_i32_1, %c0_i32_2 : i32, i32, i32, i32
  }
  func.func @transform_2(%arg0: i32) -> (i32, i32, i32) {
    %c0_i32 = arith.constant 0 : i32
    %c0_i32_0 = arith.constant 0 : i32
    %c0_i32_1 = arith.constant 0 : i32
    return %arg0, %c0_i32, %c0_i32_0 : i32, i32, i32
  }
  func.func @transform_3(%arg0: i32) -> (i32, i32, i32) {
    %c0_i32 = arith.constant 0 : i32
    %c0_i32_0 = arith.constant 0 : i32
    %c0_i32_1 = arith.constant 0 : i32
    return %arg0, %c0_i32, %c0_i32_0 : i32, i32, i32
  }
}

module attributes {stable_mosaic.version = 11 : i64} {
  func.func @_bn_relu_res_kernel(%arg0: i32, %arg1: memref<1x64x8xbf16, #tpu.memory_space<vmem>>, %arg2: memref<1x1x8xf32, #tpu.memory_space<vmem>>, %arg3: memref<1x1x8xf32, #tpu.memory_space<vmem>>, %arg4: memref<1x64x8xbf16, #tpu.memory_space<vmem>>, %arg5: memref<1x64x8xbf16, #tpu.memory_space<vmem>>) attributes {dimension_semantics = [#tpu.dimension_semantics<parallel>], iteration_bounds = array<i64: 2>, scalar_prefetch = 0 : i64, scratch_operands = 0 : i64, tpu.core_type = #tpu.core_type<tc>, window_params = [{transform_indices = @transform_0, window_bounds = array<i64: 1, 64, 8>}, {pipeline_mode = #tpu.pipeline_mode<synchronous>, transform_indices = @transform_1, window_bounds = array<i64: 1, 1, 8>}, {pipeline_mode = #tpu.pipeline_mode<synchronous>, transform_indices = @transform_2, window_bounds = array<i64: 1, 1, 8>}, {transform_indices = @transform_3, window_bounds = array<i64: 1, 64, 8>}, {transform_indices = @transform_4, window_bounds = array<i64: 1, 64, 8>}]} {
    %c0 = arith.constant 0 : index
    %c0_0 = arith.constant 0 : index
    %c0_1 = arith.constant 0 : index
    %0 = vector.load %arg1[%c0, %c0_0, %c0_1] : memref<1x64x8xbf16, #tpu.memory_space<vmem>>, vector<1x64x8xbf16>
    %1 = arith.extf %0 : vector<1x64x8xbf16> to vector<1x64x8xf32>
    %c0_2 = arith.constant 0 : index
    %c0_3 = arith.constant 0 : index
    %c0_4 = arith.constant 0 : index
    %2 = vector.load %arg2[%c0_2, %c0_3, %c0_4] : memref<1x1x8xf32, #tpu.memory_space<vmem>>, vector<1x1x8xf32>
    %3 = vector.broadcast %2 : vector<1x1x8xf32> to vector<1x64x8xf32>
    %4 = arith.mulf %1, %3 : vector<1x64x8xf32>
    %c0_5 = arith.constant 0 : index
    %c0_6 = arith.constant 0 : index
    %c0_7 = arith.constant 0 : index
    %5 = vector.load %arg3[%c0_5, %c0_6, %c0_7] : memref<1x1x8xf32, #tpu.memory_space<vmem>>, vector<1x1x8xf32>
    %6 = vector.broadcast %5 : vector<1x1x8xf32> to vector<1x64x8xf32>
    %7 = arith.addf %4, %6 : vector<1x64x8xf32>
    %cst = arith.constant 0.000000e+00 : f32
    %8 = vector.broadcast %cst : f32 to vector<1x64x8xf32>
    %9 = arith.maximumf %7, %8 : vector<1x64x8xf32>
    %c0_8 = arith.constant 0 : index
    %c0_9 = arith.constant 0 : index
    %c0_10 = arith.constant 0 : index
    %10 = vector.load %arg4[%c0_8, %c0_9, %c0_10] : memref<1x64x8xbf16, #tpu.memory_space<vmem>>, vector<1x64x8xbf16>
    %11 = arith.extf %10 : vector<1x64x8xbf16> to vector<1x64x8xf32>
    %12 = arith.addf %9, %11 : vector<1x64x8xf32>
    %13 = arith.truncf %12 : vector<1x64x8xf32> to vector<1x64x8xbf16>
    %c0_11 = arith.constant 0 : index
    %c0_12 = arith.constant 0 : index
    %c0_13 = arith.constant 0 : index
    %14 = vector.load %arg5[%c0_11, %c0_12, %c0_13] : memref<1x64x8xbf16, #tpu.memory_space<vmem>>, vector<1x64x8xbf16>
    tpu.vector_store %arg5[%c0_11, %c0_12, %c0_13], %13 {strides = array<i32>} : memref<1x64x8xbf16, #tpu.memory_space<vmem>>, vector<1x64x8xbf16>,
    return
  }
  func.func @transform_0(%arg0: i32) -> (i32, i32, i32) {
    %c0_i32 = arith.constant 0 : i32
    %c0_i32_0 = arith.constant 0 : i32
    %c0_i32_1 = arith.constant 0 : i32
    return %arg0, %c0_i32, %c0_i32_0 : i32, i32, i32
  }
  func.func @transform_1(%arg0: i32) -> (i32, i32, i32) {
    %c0_i32 = arith.constant 0 : i32
    %c0_i32_0 = arith.constant 0 : i32
    %c0_i32_1 = arith.constant 0 : i32
    %c0_i32_2 = arith.constant 0 : i32
    return %c0_i32, %c0_i32_0, %c0_i32_1 : i32, i32, i32
  }
  func.func @transform_2(%arg0: i32) -> (i32, i32, i32) {
    %c0_i32 = arith.constant 0 : i32
    %c0_i32_0 = arith.constant 0 : i32
    %c0_i32_1 = arith.constant 0 : i32
    %c0_i32_2 = arith.constant 0 : i32
    return %c0_i32, %c0_i32_0, %c0_i32_1 : i32, i32, i32
  }
  func.func @transform_3(%arg0: i32) -> (i32, i32, i32) {
    %c0_i32 = arith.constant 0 : i32
    %c0_i32_0 = arith.constant 0 : i32
    %c0_i32_1 = arith.constant 0 : i32
    return %arg0, %c0_i32, %c0_i32_0 : i32, i32, i32
  }
  func.func @transform_4(%arg0: i32) -> (i32, i32, i32) {
    %c0_i32 = arith.constant 0 : i32
    %c0_i32_0 = arith.constant 0 : i32
    %c0_i32_1 = arith.constant 0 : i32
    return %arg0, %c0_i32, %c0_i32_0 : i32, i32, i32
  }
}

module attributes {stable_mosaic.version = 11 : i64} {
  func.func @kernel(%arg0: i32, %arg1: memref<1x64x4xbf16, #tpu.memory_space<vmem>>, %arg2: memref<4x8xbf16, #tpu.memory_space<vmem>>, %arg3: memref<1x64x8xbf16, #tpu.memory_space<vmem>>, %arg4: memref<1x2x8xf32, #tpu.memory_space<vmem>>) attributes {dimension_semantics = [#tpu.dimension_semantics<parallel>], iteration_bounds = array<i64: 2>, scalar_prefetch = 0 : i64, scratch_operands = 0 : i64, tpu.core_type = #tpu.core_type<tc>, window_params = [{transform_indices = @transform_0, window_bounds = array<i64: 1, 64, 4>}, {pipeline_mode = #tpu.pipeline_mode<synchronous>, transform_indices = @transform_1, window_bounds = array<i64: 4, 8>}, {transform_indices = @transform_2, window_bounds = array<i64: 1, 64, 8>}, {transform_indices = @transform_3, window_bounds = array<i64: 1, 2, 8>}]} {
    %c0 = arith.constant 0 : index
    %c0_0 = arith.constant 0 : index
    %c0_1 = arith.constant 0 : index
    %0 = vector.load %arg1[%c0, %c0_0, %c0_1] : memref<1x64x4xbf16, #tpu.memory_space<vmem>>, vector<1x64x4xbf16>
    %1 = vector.shape_cast %0 : vector<1x64x4xbf16> to vector<64x4xbf16>
    %c0_2 = arith.constant 0 : index
    %c0_3 = arith.constant 0 : index
    %2 = vector.load %arg2[%c0_2, %c0_3] : memref<4x8xbf16, #tpu.memory_space<vmem>>, vector<4x8xbf16>
    %cst = arith.constant dense<0.000000e+00> : vector<64x8xf32>
    %3 = tpu.matmul %1, %2, %cst {dimension_numbers = #tpu.dot_dimension_numbers<[1], [0], [0], [1], [0, 0, 1, 1], [], []>} : vector<64x4xbf16>, vector<4x8xbf16>, vector<64x8xf32> -> vector<64x8xf32>
    %4 = arith.truncf %3 : vector<64x8xf32> to vector<64x8xbf16>
    %c0_4 = arith.constant 0 : index
    %c0_5 = arith.constant 0 : index
    %c0_6 = arith.constant 0 : index
    %5 = vector.load %arg3[%c0_4, %c0_5, %c0_6] : memref<1x64x8xbf16, #tpu.memory_space<vmem>>, vector<1x64x8xbf16>
    %6 = vector.shape_cast %5 : vector<1x64x8xbf16> to vector<64x8xbf16>
    %7 = vector.shape_cast %4 : vector<64x8xbf16> to vector<1x64x8xbf16>
    tpu.vector_store %arg3[%c0_4, %c0_5, %c0_6], %7 {strides = array<i32>} : memref<1x64x8xbf16, #tpu.memory_space<vmem>>, vector<1x64x8xbf16>,
    %cst_7 = arith.constant dense<0.000000e+00> : vector<8xf32>
    %8 = vector.multi_reduction <add>, %3, %cst_7 [0] : vector<64x8xf32> to vector<8xf32>
    %9 = vector.shape_cast %8 : vector<8xf32> to vector<1x8xf32>
    %10 = arith.mulf %3, %3 : vector<64x8xf32>
    %cst_8 = arith.constant dense<0.000000e+00> : vector<8xf32>
    %11 = vector.multi_reduction <add>, %10, %cst_8 [0] : vector<64x8xf32> to vector<8xf32>
    %12 = vector.shape_cast %11 : vector<8xf32> to vector<1x8xf32>
    %13 = tpu.concatenate %9, %12 in 0 : vector<1x8xf32>, vector<1x8xf32> -> vector<2x8xf32>
    %14 = vector.shape_cast %13 : vector<2x8xf32> to vector<1x2x8xf32>
    %c0_9 = arith.constant 0 : index
    %c0_10 = arith.constant 0 : index
    %c0_11 = arith.constant 0 : index
    %15 = vector.load %arg4[%c0_9, %c0_10, %c0_11] : memref<1x2x8xf32, #tpu.memory_space<vmem>>, vector<1x2x8xf32>
    tpu.vector_store %arg4[%c0_9, %c0_10, %c0_11], %14 {strides = array<i32>} : memref<1x2x8xf32, #tpu.memory_space<vmem>>, vector<1x2x8xf32>,
    return
  }
  func.func @transform_0(%arg0: i32) -> (i32, i32, i32) {
    %c0_i32 = arith.constant 0 : i32
    %c0_i32_0 = arith.constant 0 : i32
    %c0_i32_1 = arith.constant 0 : i32
    return %arg0, %c0_i32, %c0_i32_0 : i32, i32, i32
  }
  func.func @transform_1(%arg0: i32) -> (i32, i32) {
    %c0_i32 = arith.constant 0 : i32
    %c0_i32_0 = arith.constant 0 : i32
    %c0_i32_1 = arith.constant 0 : i32
    return %c0_i32, %c0_i32_0 : i32, i32
  }
  func.func @transform_2(%arg0: i32) -> (i32, i32, i32) {
    %c0_i32 = arith.constant 0 : i32
    %c0_i32_0 = arith.constant 0 : i32
    %c0_i32_1 = arith.constant 0 : i32
    return %arg0, %c0_i32, %c0_i32_0 : i32, i32, i32
  }
  func.func @transform_3(%arg0: i32) -> (i32, i32, i32) {
    %c0_i32 = arith.constant 0 : i32
    %c0_i32_0 = arith.constant 0 : i32
    %c0_i32_1 = arith.constant 0 : i32
    return %arg0, %c0_i32, %c0_i32_0 : i32, i32, i32
  }
}

module attributes {stable_mosaic.version = 11 : i64} {
  func.func @kernel(%arg0: i32, %arg1: memref<1x16x8xbf16, #tpu.memory_space<vmem>>, %arg2: memref<8x8xbf16, #tpu.memory_space<vmem>>, %arg3: memref<1x16x8xf32, #tpu.memory_space<vmem>>) attributes {dimension_semantics = [#tpu.dimension_semantics<parallel>], iteration_bounds = array<i64: 2>, scalar_prefetch = 0 : i64, scratch_operands = 0 : i64, tpu.core_type = #tpu.core_type<tc>, window_params = [{transform_indices = @transform_0, window_bounds = array<i64: 1, 16, 8>}, {pipeline_mode = #tpu.pipeline_mode<synchronous>, transform_indices = @transform_1, window_bounds = array<i64: 8, 8>}, {transform_indices = @transform_2, window_bounds = array<i64: 1, 16, 8>}]} {
    %c0 = arith.constant 0 : index
    %c0_0 = arith.constant 0 : index
    %c0_1 = arith.constant 0 : index
    %0 = vector.load %arg1[%c0, %c0_0, %c0_1] : memref<1x16x8xbf16, #tpu.memory_space<vmem>>, vector<1x16x8xbf16>
    %1 = vector.shape_cast %0 : vector<1x16x8xbf16> to vector<16x8xbf16>
    %c0_2 = arith.constant 0 : index
    %c0_3 = arith.constant 0 : index
    %2 = vector.load %arg2[%c0_2, %c0_3] : memref<8x8xbf16, #tpu.memory_space<vmem>>, vector<8x8xbf16>
    %cst = arith.constant dense<0.000000e+00> : vector<16x8xf32>
    %3 = tpu.matmul %1, %2, %cst {dimension_numbers = #tpu.dot_dimension_numbers<[1], [0], [0], [1], [0, 0, 1, 1], [], []>} : vector<16x8xbf16>, vector<8x8xbf16>, vector<16x8xf32> -> vector<16x8xf32>
    %c0_4 = arith.constant 0 : index
    %c0_5 = arith.constant 0 : index
    %c0_6 = arith.constant 0 : index
    %4 = vector.load %arg3[%c0_4, %c0_5, %c0_6] : memref<1x16x8xf32, #tpu.memory_space<vmem>>, vector<1x16x8xf32>
    %5 = vector.shape_cast %4 : vector<1x16x8xf32> to vector<16x8xf32>
    %6 = vector.shape_cast %3 : vector<16x8xf32> to vector<1x16x8xf32>
    tpu.vector_store %arg3[%c0_4, %c0_5, %c0_6], %6 {strides = array<i32>} : memref<1x16x8xf32, #tpu.memory_space<vmem>>, vector<1x16x8xf32>,
    return
  }
  func.func @transform_0(%arg0: i32) -> (i32, i32, i32) {
    %c0_i32 = arith.constant 0 : i32
    %c0_i32_0 = arith.constant 0 : i32
    %c0_i32_1 = arith.constant 0 : i32
    return %arg0, %c0_i32, %c0_i32_0 : i32, i32, i32
  }
  func.func @transform_1(%arg0: i32) -> (i32, i32) {
    %c0_i32 = arith.constant 0 : i32
    %c0_i32_0 = arith.constant 0 : i32
    %c0_i32_1 = arith.constant 0 : i32
    return %c0_i32, %c0_i32_0 : i32, i32
  }
  func.func @transform_2(%arg0: i32) -> (i32, i32, i32) {
    %c0_i32 = arith.constant 0 : i32
    %c0_i32_0 = arith.constant 0 : i32
    %c0_i32_1 = arith.constant 0 : i32
    return %arg0, %c0_i32, %c0_i32_0 : i32, i32, i32
  }
}

</mosaic_0001>

<bundles_post_ra>
// kernel: _downsample_impl.8
= control target key start
LH: loop header
LB: loop body
LE: loop exit
PB: predicated region body
PF: predicated region fallthrough
CT: control target
= control target key end

     0   :  { %s407_s12 = smov 0   ;;  %s445_s0 = inlined_call_operand.vmem [shape: bf16[2,64,8], index: 0, kind: input, shape index: {}]   ;;  %s446_s1 = inlined_call_operand.vmem [shape: f32[1,1,8], index: 1, kind: input, shape index: {}]   ;;  %s447_s2 = inlined_call_operand.vmem [shape: f32[1,1,8], index: 2, kind: input, shape index: {}]   ;;  %s448_s3 = inlined_call_operand.vmem [shape: bf16[2,64,8], index: 3, kind: output, shape index: {}]  }
   0x1 LB: > { %s321_s13 = sadd.s32 4294967295, %s385_s12   ;;  %p325_p0 = scmp.ge.s32.totalorder %s385_s12, 1  ;;  %s385_s12 = sphi %s407_s12, %s13_s12  }
   0x2   : > { %p137_p1 = scmp.lt.s32.totalorder %s385_s12, 3 }
   0x4   : > { %p138_p2 = pnand %p325_p0, %p137_p1 }
   0x5   : > { %p161_p3 = scmp.lt.s32.totalorder (!%p138_p2), %s321_s13, 1  ;;  %v330_v0 = vld [vmem:[%s446_s1] ss:$0 sm:$0xff] (!%p138_p2)  ;;  %vm257_vm0 = vcmask (!%p138_p2), 60416  }
   0x6   : > { %141 = sbr.rel (%p138_p2) target bundleno = 31 (0x1f), region = 32  ;;  %v331_v9 = vld [vmem:[%s447_s2] ss:$0 sm:$0xff] (!%p138_p2) }
   0xd   : > { %s450_s13 = smov (!%p161_p3, %s321_s13), 1 }
   0xe   : > { %s342_s14 = sshll.u32 %s450_s13, 5 }
   0xf   : > { %s165_s17 = scalar_lea.vmem %s445_s0, %s342_s14  ;;  %s170_s24 = scalar_lea.vmem %s448_s3, %s342_s14 }
  0x10   : > { %v353_v1 = vld [vmem:[%s165_s17] sm:$0xff]   ;;  %v368_v2 = vld [vmem:[%s165_s17 + $0x8] sm:$0xff]   ;;  %v369_v3 = vld [vmem:[%s165_s17 + $0x10] sm:$0xff]  }
  0x11   : > { %v354_v4 = vunpack.c.l.bf16 %v353_v1  ;;  %v355_v5 = vunpack.c.h.bf16 %v353_v1  ;;  %v358_v6 = vunpack.c.l.bf16 %v368_v2  ;;  %v359_v7 = vunpack.c.h.bf16 %v368_v2  ;;  %v370_v8 = vld [vmem:[%s165_s17 + $0x18] sm:$0xff]  }
  0x12   : > { %v362_v10 = vunpack.c.l.bf16 %v369_v3  ;;  %v363_v11 = vunpack.c.h.bf16 %v369_v3  ;;  %v366_v12 = vunpack.c.l.bf16 %v370_v8  ;;  %v367_v13 = vunpack.c.h.bf16 %v370_v8 }
  0x13   : > { %v194_v14 = vmul.f32 %v354_v4, %v330_v0  ;;  %v195_v15 = vmul.f32 %v355_v5, %v330_v0  ;;  %v196_v16 = vmul.f32 %v358_v6, %v330_v0  ;;  %v197_v17 = vmul.f32 %v359_v7, %v330_v0 }
  0x14   : > { %v198_v18 = vmul.f32 %v362_v10, %v330_v0  ;;  %v199_v19 = vmul.f32 %v363_v11, %v330_v0  ;;  %v200_v20 = vmul.f32 %v366_v12, %v330_v0  ;;  %v201_v21 = vmul.f32 %v367_v13, %v330_v0 }
  0x15   : > { %v209_v22 = vadd.f32 %v331_v9, %v194_v14  ;;  %v210_v23 = vadd.f32 %v331_v9, %v195_v15  ;;  %v211_v24 = vadd.f32 %v331_v9, %v196_v16  ;;  %v212_v25 = vadd.f32 %v331_v9, %v197_v17 }
  0x16   : > { %v213_v26 = vadd.f32 %v331_v9, %v198_v18  ;;  %v214_v27 = vadd.f32 %v331_v9, %v199_v19  ;;  %v215_v28 = vadd.f32 %v331_v9, %v200_v20  ;;  %v216_v29 = vadd.f32 %v331_v9, %v201_v21 }
  0x17   : > { %v217_v30 = vmax.f32 %v209_v22, 0.0  ;;  %v218_v31 = vmax.f32 %v210_v23, 0.0  ;;  %v219_v32 = vmax.f32 %v211_v24, 0.0  ;;  %v220_v33 = vmax.f32 %v212_v25, 0.0 }
  0x18   : > { %v221_v34 = vmax.f32 %v213_v26, 0.0  ;;  %v222_v35 = vmax.f32 %v214_v27, 0.0  ;;  %v223_v36 = vmax.f32 %v215_v28, 0.0  ;;  %v224_v37 = vmax.f32 %v216_v29, 0.0 }
  0x19   : > { %v344_v38 = vpack.c.bf16 %v217_v30, %v217_v30  ;;  %v345_v39 = vpack.c.bf16 %v218_v31, %v218_v31  ;;  %v346_v40 = vpack.c.bf16 %v219_v32, %v219_v32  ;;  %v347_v41 = vpack.c.bf16 %v220_v33, %v220_v33 }
  0x1a   : > { %v348_v42 = vpack.c.bf16 %v221_v34, %v221_v34  ;;  %v349_v43 = vpack.c.bf16 %v222_v35, %v222_v35  ;;  %v350_v44 = vpack.c.bf16 %v223_v36, %v223_v36  ;;  %v351_v45 = vpack.c.bf16 %v224_v37, %v224_v37 }
  0x1b   : > { %258 = vst.msk [vmem:[%s170_s24] sm:$0xf] %vm257_vm0, %v344_v38  ;;  %259 = vst.msk [vmem:[%s170_s24 + $0x4] sm:$0xf] %vm257_vm0, %v345_v39 }
  0x1c   : > { %260 = vst.msk [vmem:[%s170_s24 + $0x8] sm:$0xf] %vm257_vm0, %v346_v40  ;;  %261 = vst.msk [vmem:[%s170_s24 + $0xc] sm:$0xf] %vm257_vm0, %v347_v41 }
  0x1d   : > { %262 = vst.msk [vmem:[%s170_s24 + $0x10] sm:$0xf] %vm257_vm0, %v348_v42  ;;  %263 = vst.msk [vmem:[%s170_s24 + $0x14] sm:$0xf] %vm257_vm0, %v349_v43 }
  0x1e   : > { %264 = vst.msk [vmem:[%s170_s24 + $0x18] sm:$0xf] %vm257_vm0, %v350_v44  ;;  %265 = vst.msk [vmem:[%s170_s24 + $0x1c] sm:$0xf] %vm257_vm0, %v351_v45 }
  0x1f PF: > { %s13_s12 = sadd.s32 1, %s385_s12  }
  0x20   : > { %p10_p4 = scmp.ge.s32.totalorder %s13_s12, 4  }
  0x22   :  { %12 = sbr.rel (!%p10_p4) target bundleno = 1 (0x1), region = 62 }

// kernel: _downsample_impl.7
= control target key start
LH: loop header
LB: loop body
LE: loop exit
PB: predicated region body
PF: predicated region fallthrough
CT: control target
= control target key end

     0   :  { %s1284_s12 = smov 0   ;;  %s1491_s0 = inlined_call_operand.vmem [shape: bf16[2,9,9,16], index: 0, kind: input, shape index: {}]   ;;  %s1492_s1 = inlined_call_operand.vmem [shape: bf16[2,2,16,8], index: 1, kind: input, shape index: {}]   ;;  %s1493_s2 = inlined_call_operand.vmem [shape: bf16[2,64,8], index: 2, kind: output, shape index: {0}]   ;;  %s1494_s3 = inlined_call_operand.vmem [shape: f32[2,2,8], index: 3, kind: output, shape index: {1}]  }
   0x1 LB: > { %s1057_s13 = sadd.s32 4294967295, %s1262_s12   ;;  %p1061_p0 = scmp.ge.s32.totalorder %s1262_s12, 1  ;;  %s1262_s12 = sphi %s1284_s12, %s14_s12  }
   0x2   : > { %p140_p1 = scmp.lt.s32.totalorder %s1262_s12, 3 }
   0x4   : > { %p141_p2 = pnand %p1061_p0, %p140_p1 }
   0x5   : > { %v1244_v0 = vld [vmem:[%s1492_s1 + $0x10] sm:$0xff] (!%p141_p2)   ;;  %p168_p3 = scmp.lt.s32.totalorder (!%p141_p2), %s1057_s13, 1  ;;  %v1247_v1 = vld [vmem:[%s1492_s1 + $0x8] sm:$0xff] (!%p141_p2)   ;;  %v1303_v2 = vld [vmem:[%s1492_s1] sm:$0xff] (!%p141_p2)   ;;  %vm337_vm0 = vcmask (!%p141_p2), 130048   ;;  %vm907_vm4 = vcmask (!%p141_p2), 60416  }
   0x6   : > { %144 = sbr.rel (%p141_p2) target bundleno = 312 (0x138), region = 28  ;;  %1191 = vmatprep.subr.bf16.mxu0 (!%p141_p2), %v1244_v0  ;;  %1171 = vmatprep.subr.bf16.mxu1 (!%p141_p2), %v1247_v1  ;;  %v1251_v3 = vld [vmem:[%s1492_s1 + $0x18] sm:$0xff] (!%p141_p2)   ;;  %vm201_vm1 = vsmask.f32 (!%p141_p2), 3328  ;;  %vm202_vm2 = vsmask.f32 (!%p141_p2), 7440 }
   0x7   : > { %1192 = vmatpush3.bf16.msra.mxu0 (!%p141_p2), %v1244_v0  ;;  %1172 = vmatpush3.bf16.msra.mxu1 (!%p141_p2), %v1247_v1  ;;  %vm1346_vm3 = vmor (!%p141_p2), %vm201_vm1, %vm202_vm2  ;;  %vm916_vm5 = vcmask (!%p141_p2), 64512   ;;  %vm967_vm6 = vcmask (!%p141_p2), 1040384   ;;  %vm969_vm7 = vcmask (!%p141_p2), 58368  }
   0x8   : > { %1181 = vmatprep.subr.bf16.mxu1 (!%p141_p2), %v1303_v2  ;;  %1201 = vmatprep.subr.bf16.mxu0 (!%p141_p2), %v1251_v3 }
   0xd   : > { %s1498_s13 = smov (!%p168_p3, %s1057_s13), 1 }
   0xe   : > { %s1235_s20 = smul.u32 72, %s1498_s13  ;;  %s1142_s26 = sshll.u32 %s1498_s13, 5 }
   0xf   : > { %s1450_s29 = scalar_lea.vmem %s1493_s2, %s1142_s26  ;;  %s1065_s30 = sshll.u32 %s1498_s13, 1 }
  0x10   : > { %s1313_s25 = scalar_lea.vmem %s1491_s0, %s1235_s20  ;;  %s181_s6 = scalar_lea.vmem %s1494_s3, %s1065_s30 }
  0x11   : > { %v1245_v4 = vld [vmem:[%s1313_s25 + $0x8] ss:$8 sps:$4 sm:$0xff]   ;;  %v1246_v5 = vld [vmem:[%s1313_s25 + $0x18] ss:$8 sps:$4 sm:$0xff]   ;;  %v193_v9 = vld [vmem:[%s1313_s25 + $0x4] sm:$0x1] }
  0x12   : > { %1193 = vmatprep.mubr.msk.bf16.mxu0 %vm337_vm0, %v1245_v4  ;;  %v1248_v6 = vld [vmem:[%s1313_s25 + $0x28] ss:$8 sps:$4 sm:$0xff]   ;;  %v1321_v7 = vld [vmem:[%s1313_s25] sm:$0xf]  ;;  %v194_v10 = vld [vmem:[%s1313_s25 + $0xc] sm:$0x1] }
  0x13   : > { %1194 = vmatmul.mubr.msk.bf16.vlgmr.msra.gmra.mrb[0].mxu0 %vm337_vm0, %v1246_v5  ;;  %v1324_v8 = vld [vmem:[%s1313_s25 + $0x8] sm:$0xf]  ;;  %v205_v11 = vshrl.u32 %v1321_v7, 16  ;;  %v208_v12 = vshll.u32 %v1321_v7, 16  ;;  %v214_v13 = vshll.u32 %v193_v9, 16  ;;  %v228_v16 = vshll.u32 %v194_v10, 16 }
  0x14   : > { %1197 = vmatprep.mubr.msk.bf16.mxu0 %vm337_vm0, %v1248_v6  ;;  %v219_v14 = vshrl.u32 %v1324_v8, 16  ;;  %1202 = vmatpush3.bf16.msra.mxu0 %v1251_v3  ;;  %v222_v15 = vshll.u32 %v1324_v8, 16  ;;  %v1250_v21 = vld [vmem:[%s1313_s25 + $0x38] ss:$8 sps:$4 sm:$0xff]   ;;  %v1335_v24 = vld [vmem:[%s1313_s25 + $0x10] sm:$0xf] }
  0x15   : > { %v207_v17 = vrot.slane %v205_v11, 4  ;;  %v210_v18 = vrot.slane %v208_v12, 5  ;;  %v216_v19 = vrot.slane %v214_v13, 5  ;;  %v230_v23 = vrot.slane %v228_v16, 5  ;;  %v1338_v25 = vld [vmem:[%s1313_s25 + $0x18] sm:$0xf] }
  0x16   : > { %v221_v20 = vrot.slane %v219_v14, 4  ;;  %v224_v22 = vrot.slane %v222_v15, 5  ;;  %v195_v27 = vld [vmem:[%s1313_s25 + $0x14] sm:$0x1]  ;;  %v196_v28 = vld [vmem:[%s1313_s25 + $0x1c] sm:$0x1] }
  0x17   : > { %v211_v26 = vor.u32 %v210_v18, %v207_v17  ;;  %v233_v29 = vshrl.u32 %v1335_v24, 16  ;;  %v236_v30 = vshll.u32 %v1335_v24, 16  ;;  %v242_v33 = vshll.u32 %v195_v27, 16  ;;  %v1105_v36 = vld [vmem:[%s1313_s25 + $0x8] sm:$0xf] }
  0x18   : > { %v225_v32 = vor.u32 %v224_v22, %v221_v20  ;;  %v247_v34 = vshrl.u32 %v1338_v25, 16  ;;  %v250_v35 = vshll.u32 %v1338_v25, 16  ;;  %v256_v40 = vshll.u32 %v196_v28, 16  ;;  %v1106_v41 = vld [vmem:[%s1313_s25 + $0xc] sm:$0x1] }
  0x19   : > { %v212_v37 = vrot.slane %v211_v26, 4  ;;  %v235_v38 = vrot.slane %v233_v29, 4  ;;  %v238_v39 = vrot.slane %v236_v30, 5  ;;  %v244_v43 = vrot.slane %v242_v33, 5  ;;  %v1107_v46 = vld [vmem:[%s1313_s25 + $0x10] sm:$0xf] }
  0x1a   : > { %v226_v42 = vrot.slane %v225_v32, 4  ;;  %v249_v44 = vrot.slane %v247_v34, 4  ;;  %v252_v45 = vrot.slane %v250_v35, 5  ;;  %v258_v49 = vrot.slane %v256_v40, 5  ;;  %v1108_v53 = vld [vmem:[%s1313_s25 + $0x14] sm:$0x1] }
  0x1b   : > { %1198 = vmatmul.mubr.msk.bf16.gmra.mrb[4].mxu0 %vm337_vm0, %v1250_v21  ;;  %v217_v47 = vsel %vm1346_vm3, %v212_v37, %v216_v19  ;;  %v239_v48 = vor.u32 %v238_v39, %v235_v38  ;;  %v658_v50 = vshrl.u32 %v1105_v36, 16  ;;  %v661_v54 = vshll.u32 %v1105_v36, 16  ;;  %v1362_v56 = vld [vmem:[%s1313_s25 + $0x20] sm:$0xf]  ;;  %v197_v1 = vld [vmem:[%s1313_s25 + $0x24] sm:$0x1] }
  0x1c   : > { %v231_v51 = vsel %vm1346_vm3, %v226_v42, %v230_v23  ;;  %v253_v52 = vor.u32 %v252_v45, %v249_v44  ;;  %v667_v55 = vshll.u32 %v1106_v41, 16  ;;  %v672_v60 = vshrl.u32 %v1107_v46, 16  ;;  %v1369_v6 = vld [vmem:[%s1313_s25 + $0x28] sm:$0xf]  ;;  %v198_v13 = vld [vmem:[%s1313_s25 + $0x2c] sm:$0x1] }
  0x1d   : > { %v1068_v57 = vcombine.low %v217_v47, %v231_v51  ;;  %v240_v58 = vrot.slane %v239_v48, 4  ;;  %v660_v59 = vrot.slane %v658_v50, 4  ;;  %v663_v62 = vrot.slane %v661_v54, 5  ;;  %v1109_v15 = vld [vmem:[%s1313_s25 + $0x18] sm:$0xf] }
  0x1e   : > { %v254_v61 = vrot.slane %v253_v52, 4  ;;  %v669_v63 = vrot.slane %v667_v55, 5  ;;  %v675_v0 = vshll.u32 %v1107_v46, 16  ;;  %v674_v4 = vrot.slane %v672_v60, 4  ;;  %v1110_v26 = vld [vmem:[%s1313_s25 + $0x1c] sm:$0x1] }
  0x1f   : > { %1173 = vmatprep.mubr.msk.bf16.mxu1 %vm337_vm0, %v1068_v57  ;;  %v245_v3 = vsel %vm1346_vm3, %v240_v58, %v244_v43  ;;  %v681_v5 = vshll.u32 %v1108_v53, 16  ;;  %v261_v9 = vshrl.u32 %v1362_v56, 16  ;;  %v664_v11 = vor.u32 %v663_v62, %v660_v59  ;;  %v1111_v30 = vld [vmem:[%s1313_s25 + $0x20] sm:$0xf]  ;;  %v1112_v39 = vld [vmem:[%s1313_s25 + $0x24] sm:$0x1] }
  0x20   : > { %v259_v10 = vsel %vm1346_vm3, %v254_v61, %v258_v49  ;;  %v677_v12 = vrot.slane %v675_v0, 5  ;;  %v264_v14 = vshll.u32 %v1362_v56, 16  ;;  %v270_v19 = vshll.u32 %v197_v1, 16  ;;  %v1392_v50 = vld [vmem:[%s1313_s25 + $0x38] sm:$0xf] }
  0x21   : > { %v1069_v16 = vcombine.low %v245_v3, %v259_v10  ;;  %v683_v17 = vrot.slane %v681_v5, 5  ;;  %v263_v18 = vrot.slane %v261_v9, 4  ;;  %v665_v20 = vrot.slane %v664_v11, 4  ;;  %v199_v51 = vld [vmem:[%s1313_s25 + $0x34] sm:$0x1] }
  0x22   : > { %v678_v21 = vor.u32 %v677_v12, %v674_v4  ;;  %v266_v22 = vrot.slane %v264_v14, 5  ;;  %v275_v23 = vshrl.u32 %v1369_v6, 16  ;;  %v272_v27 = vrot.slane %v270_v19, 5  ;;  %v200_v62 = vld [vmem:[%s1313_s25 + $0x3c] sm:$0x1] }
  0x23   : > { %1174 = vmatmul.mubr.msk.bf16.vlgmr.msra.gmra.mrb[0].mxu1 %vm337_vm0, %v1069_v16  ;;  %v278_v28 = vshll.u32 %v1369_v6, 16  ;;  %v284_v29 = vshll.u32 %v198_v13, 16  ;;  %v686_v32 = vshrl.u32 %v1109_v15, 16  ;;  %v670_v33 = vsel %vm1346_vm3, %v665_v20, %v669_v63  ;;  %v1113_v10 = vld [vmem:[%s1313_s25 + $0x28] sm:$0xf] }
  0x24   : > { %1182 = vmatpush3.bf16.msra.mxu1 %v1303_v2  ;;  %v679_v34 = vrot.slane %v678_v21, 4  ;;  %v267_v35 = vor.u32 %v266_v22, %v263_v18  ;;  %v277_v36 = vrot.slane %v275_v23, 4  ;;  %v689_v41 = vshll.u32 %v1109_v15, 16  ;;  %v1389_v2 = vld [vmem:[%s1313_s25 + $0x30] sm:$0xf] }
  0x25   : > { %v280_v37 = vrot.slane %v278_v28, 5  ;;  %v286_v38 = vrot.slane %v284_v29, 5  ;;  %v688_v40 = vrot.slane %v686_v32, 4  ;;  %v695_v44 = vshll.u32 %v1110_v26, 16  ;;  %v1114_v11 = vld [vmem:[%s1313_s25 + $0x2c] sm:$0x1] }
  0x26   : > { %v684_v42 = vsel %vm1346_vm3, %v679_v34, %v683_v17  ;;  %v268_v43 = vrot.slane %v267_v35, 4  ;;  %v700_v45 = vshrl.u32 %v1111_v30, 16  ;;  %v691_v48 = vrot.slane %v689_v41, 5  ;;  %v1115_v15 = vld [vmem:[%s1313_s25 + $0x30] sm:$0xf] }
  0x27   : > { %v1123_v46 = vcombine.low %v670_v33, %v684_v42  ;;  %v281_v47 = vor.u32 %v280_v37, %v277_v36  ;;  %v703_v49 = vshll.u32 %v1111_v30, 16  ;;  %v697_v53 = vrot.slane %v695_v44, 5  ;;  %v1116_v22 = vld [vmem:[%s1313_s25 + $0x34] sm:$0x1]  ;;  %v1117_v30 = vld [vmem:[%s1313_s25 + $0x38] sm:$0xf] }
  0x28   : > { %v273_v52 = vsel %vm1346_vm3, %v268_v43, %v272_v27  ;;  %v702_v54 = vrot.slane %v700_v45, 4  ;;  %v709_v55 = vshll.u32 %v1112_v39, 16  ;;  %v692_v58 = vor.u32 %v691_v48, %v688_v40  ;;  %v1118_v36 = vld [vmem:[%s1313_s25 + $0x3c] sm:$0x1]  ;;  %v1119_v41 = vld [vmem:[%s1313_s25 + $0x40] sm:$0xf] }
  0x29   : > { %1203 = vmatprep.mubr.msk.bf16.mxu0 %vm337_vm0, %v1123_v46  ;;  %v282_v57 = vrot.slane %v281_v47, 4  ;;  %v705_v59 = vrot.slane %v703_v49, 5  ;;  %v289_v60 = vshrl.u32 %v1389_v2, 16  ;;  %v292_v63 = vshll.u32 %v1389_v2, 16 }
  0x2a   : > { %v711_v61 = vrot.slane %v709_v55, 5  ;;  %v298_v0 = vshll.u32 %v199_v51, 16  ;;  %v303_v1 = vshrl.u32 %v1392_v50, 16  ;;  %v693_v4 = vrot.slane %v692_v58, 4 }
  0x2b   : > { %v287_v3 = vsel %vm1346_vm3, %v282_v57, %v286_v38  ;;  %v706_v5 = vor.u32 %v705_v59, %v702_v54  ;;  %v291_v9 = vrot.slane %v289_v60, 4  ;;  %v294_v13 = vrot.slane %v292_v63, 5 }
  0x2c   : > { %v1070_v12 = vcombine.low %v273_v52, %v287_v3  ;;  %v305_v14 = vrot.slane %v303_v1, 4  ;;  %v1077_v16 = vcombine.low %v1321_v7, %v1324_v8  ;;  %v698_v17 = vsel %vm1346_vm3, %v693_v4, %v697_v53  ;;  %v1120_v52 = vld [vmem:[%s1313_s25 + $0x44] sm:$0x1] }
  0x2d   : > { %v707_v18 = vrot.slane %v706_v5, 4  ;;  %v306_v19 = vshll.u32 %v1392_v50, 16  ;;  %v312_v20 = vshll.u32 %v200_v62, 16  ;;  %v295_v21 = vor.u32 %v294_v13, %v291_v9 }
  0x2e   : > { %1177 = vmatprep.mubr.msk.bf16.mxu1 %vm337_vm0, %v1070_v12  ;;  %v714_v23 = vshrl.u32 %v1113_v10, 16  ;;  %v717_v26 = vshll.u32 %v1113_v10, 16  ;;  %v723_v27 = vshll.u32 %v1114_v11, 16  ;;  %v300_v7 = vrot.slane %v298_v0, 5 }
  0x2f   : > { %v712_v28 = vsel %vm1346_vm3, %v707_v18, %v711_v61  ;;  %v308_v8 = vrot.slane %v306_v19, 5  ;;  %v728_v29 = vshrl.u32 %v1115_v15, 16  ;;  %v296_v33 = vrot.slane %v295_v21, 4 }
  0x30   : > { %v1124_v32 = vcombine.low %v698_v17, %v712_v28  ;;  %v716_v34 = vrot.slane %v714_v23, 4  ;;  %v719_v35 = vrot.slane %v717_v26, 5  ;;  %v314_v38 = vrot.slane %v312_v20, 5 }
  0x31   : > { %v309_v37 = vor.u32 %v308_v8, %v305_v14  ;;  %v730_v39 = vrot.slane %v728_v29, 4  ;;  %v731_v40 = vshll.u32 %v1115_v15, 16  ;;  %v725_v43 = vrot.slane %v723_v27, 5 }
  0x32   : > { %1204 = vmatmul.mubr.msk.bf16.vlgmr.msra.gmra.mrb[0].mxu0 %vm337_vm0, %v1124_v32  ;;  %v720_v42 = vor.u32 %v719_v35, %v716_v34  ;;  %v737_v44 = vshll.u32 %v1116_v22, 16  ;;  %v742_v45 = vshrl.u32 %v1117_v30, 16  ;;  %v301_v46 = vsel %vm1346_vm3, %v296_v33, %v300_v7 }
  0x33   : > { %v310_v47 = vrot.slane %v309_v37, 4  ;;  %v733_v48 = vrot.slane %v731_v40, 5  ;;  %v745_v49 = vshll.u32 %v1117_v30, 16  ;;  %v751_v54 = vshll.u32 %v1118_v36, 16 }
  0x34   : > { %v721_v51 = vrot.slane %v720_v42, 4  ;;  %v744_v53 = vrot.slane %v742_v45, 4  ;;  %v756_v55 = vshrl.u32 %v1119_v41, 16  ;;  %v739_v59 = vrot.slane %v737_v44, 5 }
  0x35   : > { %v315_v57 = vsel %vm1346_vm3, %v310_v47, %v314_v38  ;;  %v734_v58 = vor.u32 %v733_v48, %v730_v39  ;;  %v747_v60 = vrot.slane %v745_v49, 5  ;;  %v759_v63 = vshll.u32 %v1119_v41, 16 }
  0x36   : > { %v1071_v61 = vcombine.low %v301_v46, %v315_v57  ;;  %v758_v62 = vrot.slane %v756_v55, 4  ;;  %v726_v0 = vsel %vm1346_vm3, %v721_v51, %v725_v43  ;;  %v765_v4 = vshll.u32 %v1120_v52, 16 }
  0x37   : > { %v735_v1 = vrot.slane %v734_v58, 4  ;;  %v748_v3 = vor.u32 %v747_v60, %v744_v53  ;;  %v753_v5 = vrot.slane %v751_v54, 5  ;;  %v761_v9 = vrot.slane %v759_v63, 5 }
  0x38   : > { %1178 = vmatmul.mubr.msk.bf16.gmra.mrb[4].mxu1 %vm337_vm0, %v1071_v61  ;;  %v767_v14 = vrot.slane %v765_v4, 5  ;;  %v1078_v18 = vcombine.low %v1335_v24, %v1338_v25  ;;  %v1079_v19 = vcombine.low %v1362_v56, %v1369_v6  ;;  %v1080_v21 = vcombine.low %v1389_v2, %v1392_v50 }
  0x39   : > { %v740_v10 = vsel %vm1346_vm3, %v735_v1, %v739_v59  ;;  %1183 = vmatprep.mubr.msk.bf16.mxu1 %vm337_vm0, %v1077_v16  ;;  %v749_v11 = vrot.slane %v748_v3, 4  ;;  %v762_v13 = vor.u32 %v761_v9, %v758_v62 }
  0x3a   : > { %v1125_v12 = vcombine.low %v726_v0, %v740_v10 }
  0x3b   : > { %v754_v15 = vsel %vm1346_vm3, %v749_v11, %v753_v5  ;;  %v763_v17 = vrot.slane %v762_v13, 4 }
  0x3c   : > { %1207 = vmatprep.mubr.msk.bf16.mxu0 %vm337_vm0, %v1125_v12 }
  0x3d   : > { %v768_v16 = vsel %vm1346_vm3, %v763_v17, %v767_v14 }
  0x3e   : > { %v1126_v20 = vcombine.low %v754_v15, %v768_v16 }
  0x40   : > { %1184 = vmatmul.mubr.msk.bf16.vlgmr.msra.gmra.mrb[0].mxu1 %vm337_vm0, %v1078_v18  ;;  %1208 = vmatmul.mubr.msk.bf16.gmra.mrb[4].mxu0 %vm337_vm0, %v1126_v20 }
  0x41   : > { %1187 = vmatprep.mubr.msk.bf16.mxu1 %vm337_vm0, %v1079_v19 }
  0x48   : > { %1188 = vmatmul.mubr.msk.bf16.gmra.mrb[4].mxu1 %vm337_vm0, %v1080_v21 }
 0x105   : > { %v1205_v22 = vpop.f32.mrb[0].mxu0 }
 0x106   : > { %v836_v24 = vpop.f32.mrb[1].mxu0 }
 0x107   : > { %v1206_v25 = vpop.f32.mrb[2].mxu0 }
 0x108   : > { %v839_v23 = vpop.f32.mrb[3].mxu0 }
 0x113   : > { %v1185_v56 = vpop.f32.mrb[0].mxu1  ;;  %v1209_v31 = vpop.f32.mrb[4].mxu0 }
 0x114   : > { %v1211_v6 = vadd.f32 %v1205_v22, %v1185_v56  ;;  %v487_v26 = vpop.f32.mrb[1].mxu1  ;;  %v852_v2 = vpop.f32.mrb[5].mxu0 }
 0x115   : > { %v1212_v50 = vadd.f32 %v836_v24, %v487_v26  ;;  %v1186_v27 = vpop.f32.mrb[2].mxu1  ;;  %v1210_v7 = vpop.f32.mrb[6].mxu0 }
 0x116   : > { %v1145_v28 = vpack.c.bf16 %v1211_v6, %v1211_v6  ;;  %v1213_v8 = vadd.f32 %v1206_v25, %v1186_v27  ;;  %v490_v29 = vpop.f32.mrb[3].mxu1  ;;  %v855_v33 = vpop.f32.mrb[7].mxu0  ;;  %v940_v35 = vmul.f32 %v1211_v6, %v1211_v6  ;;  %v920_v43 = vsel %vm916_vm5, %v1211_v6, 0.0 }
 0x117   : > { %v1143_v30 = vpack.c.bf16 %v1212_v50, %v1212_v50  ;;  %v938_v32 = vmul.f32 %v1212_v50, %v1212_v50  ;;  %v1214_v34 = vadd.f32 %v839_v23, %v490_v29  ;;  %v917_v37 = vsel %vm916_vm5, %v1212_v50, 0.0 }
 0x118   : > { %910 = vst.msk [vmem:[%s1450_s29 + $0x8] sm:$0xf] %vm907_vm4, %v1145_v28  ;;  %v1146_v36 = vpack.c.bf16 %v1213_v8, %v1213_v8  ;;  %v941_v41 = vmul.f32 %v1213_v8, %v1213_v8  ;;  %v949_v52 = vsel %vm916_vm5, %v940_v35, 0.0  ;;  %v922_v55 = vsel %vm916_vm5, %v1213_v8, 0.0 }
 0x119   : > { %908 = vst.msk [vmem:[%s1450_s29] sm:$0xf] %vm907_vm4, %v1143_v30  ;;  %v1144_v38 = vpack.c.bf16 %v1214_v34, %v1214_v34  ;;  %v918_v39 = vsel %vm916_vm5, %v1214_v34, 0.0  ;;  %v939_v40 = vmul.f32 %v1214_v34, %v1214_v34  ;;  %v946_v44 = vsel %vm916_vm5, %v938_v32, 0.0 }
 0x11a   : > { %911 = vst.msk [vmem:[%s1450_s29 + $0xc] sm:$0xf] %vm907_vm4, %v1146_v36  ;;  %v919_v42 = vadd.f32 %v918_v39, %v917_v37  ;;  %v951_v57 = vsel %vm916_vm5, %v941_v41, 0.0 }
 0x11b   : > { %909 = vst.msk [vmem:[%s1450_s29 + $0x4] sm:$0xf] %vm907_vm4, %v1144_v38  ;;  %v947_v45 = vsel %vm916_vm5, %v939_v40, 0.0  ;;  %v1189_v46 = vpop.f32.mrb[4].mxu1 }
 0x11c   : > { %v921_v47 = vadd.f32 %v920_v43, %v919_v42  ;;  %v948_v48 = vadd.f32 %v947_v45, %v946_v44  ;;  %v1215_v49 = vadd.f32 %v1209_v31, %v1189_v46  ;;  %v503_v51 = vpop.f32.mrb[5].mxu1 }
 0x11d   : > { %v1216_v53 = vadd.f32 %v852_v2, %v503_v51  ;;  %v1190_v54 = vpop.f32.mrb[6].mxu1 }
 0x11e   : > { %v950_v58 = vadd.f32 %v949_v52, %v948_v48  ;;  %v1149_v59 = vpack.c.bf16 %v1215_v49, %v1215_v49  ;;  %v506_v60 = vpop.f32.mrb[7].mxu1  ;;  %v923_v62 = vadd.f32 %v922_v55, %v921_v47  ;;  %v1217_v3 = vadd.f32 %v1210_v7, %v1190_v54 }
 0x11f   : > { %v1147_v61 = vpack.c.bf16 %v1216_v53, %v1216_v53  ;;  %v924_v63 = vsel %vm916_vm5, %v1216_v53, 0.0  ;;  %v942_v0 = vmul.f32 %v1216_v53, %v1216_v53  ;;  %v1218_v4 = vadd.f32 %v855_v33, %v506_v60 }
 0x120   : > { %914 = vst.msk [vmem:[%s1450_s29 + $0x18] sm:$0xf] %vm907_vm4, %v1149_v59  ;;  %v952_v1 = vadd.f32 %v951_v57, %v950_v58  ;;  %v925_v5 = vadd.f32 %v924_v63, %v923_v62  ;;  %v1150_v11 = vpack.c.bf16 %v1217_v3, %v1217_v3  ;;  %v944_v12 = vmul.f32 %v1215_v49, %v1215_v49 }
 0x121   : > { %912 = vst.msk [vmem:[%s1450_s29 + $0x10] sm:$0xf] %vm907_vm4, %v1147_v61  ;;  %v953_v9 = vsel %vm916_vm5, %v942_v0, 0.0  ;;  %v1148_v13 = vpack.c.bf16 %v1218_v4, %v1218_v4  ;;  %v926_v14 = vsel %vm916_vm5, %v1218_v4, 0.0  ;;  %v943_v15 = vmul.f32 %v1218_v4, %v1218_v4 }
 0x122   : > { %v954_v10 = vadd.f32 %v953_v9, %v952_v1  ;;  %915 = vst.msk [vmem:[%s1450_s29 + $0x1c] sm:$0xf] %vm907_vm4, %v1150_v11  ;;  %v927_v17 = vadd.f32 %v926_v14, %v925_v5  ;;  %v928_v18 = vsel %vm916_vm5, %v1215_v49, 0.0  ;;  %v945_v19 = vmul.f32 %v1217_v3, %v1217_v3 }
 0x123   : > { %913 = vst.msk [vmem:[%s1450_s29 + $0x14] sm:$0xf] %vm907_vm4, %v1148_v13  ;;  %v955_v16 = vsel %vm916_vm5, %v943_v15, 0.0  ;;  %v957_v22 = vsel %vm916_vm5, %v944_v12, 0.0  ;;  %v930_v24 = vsel %vm916_vm5, %v1217_v3, 0.0 }
 0x124   : > { %v929_v20 = vadd.f32 %v928_v18, %v927_v17  ;;  %v956_v21 = vadd.f32 %v955_v16, %v954_v10  ;;  %v959_v56 = vsel %vm916_vm5, %v945_v19, 0.0 }
 0x126   : > { %v931_v25 = vadd.f32 %v930_v24, %v929_v20  ;;  %v958_v23 = vadd.f32 %v957_v22, %v956_v21 }
 0x128   : > { %v932_v31 = vrot.slane %v931_v25, 4  ;;  %v960_v6 = vadd.f32 %v959_v56, %v958_v23 }
 0x12a   : > { %v933_v26 = vadd.f32 %v932_v31, %v931_v25  ;;  %v961_v2 = vrot.slane %v960_v6, 4 }
 0x12c   : > { %v934_v50 = vrot.slane %v933_v26, 2  ;;  %v962_v27 = vadd.f32 %v961_v2, %v960_v6 }
 0x12e   : > { %v935_v28 = vadd.f32 %v934_v50, %v933_v26  ;;  %v963_v7 = vrot.slane %v962_v27, 2 }
 0x130   : > { %v936_v8 = vrot.slane %v935_v28, 1  ;;  %v964_v29 = vadd.f32 %v963_v7, %v962_v27 }
 0x132   : > { %v965_v30 = vrot.slane %v964_v29, 1  ;;  %v937_v32 = vadd.f32 %v936_v8, %v935_v28 }
 0x134   : > { %v966_v33 = vadd.f32 %v965_v30, %v964_v29 }
 0x136   : > { %v968_v34 = vsel %vm967_vm6, %v937_v32, %v966_v33 }
 0x137   : > { %970 = vst.msk [vmem:[%s181_s6] sm:$0x3] %vm969_vm7, %v968_v34 }
 0x138 PF: > { %s14_s12 = sadd.s32 1, %s1262_s12  }
 0x139   : > { %p11_p4 = scmp.ge.s32.totalorder %s14_s12, 4  }
 0x13b   :  { %13 = sbr.rel (!%p11_p4) target bundleno = 1 (0x1), region = 74 }

// kernel: _downsample_impl.12
= control target key start
LH: loop header
LB: loop body
LE: loop exit
PB: predicated region body
PF: predicated region fallthrough
CT: control target
= control target key end

     0   :  { %s517_s15 = smov 0   ;;  %s556_s0 = inlined_call_operand.vmem [shape: bf16[2,64,8], index: 0, kind: input, shape index: {}]   ;;  %s557_s1 = inlined_call_operand.vmem [shape: f32[1,1,8], index: 1, kind: input, shape index: {}]   ;;  %s558_s2 = inlined_call_operand.vmem [shape: f32[1,1,8], index: 2, kind: input, shape index: {}]   ;;  %s559_s3 = inlined_call_operand.vmem [shape: bf16[2,64,8], index: 3, kind: input, shape index: {}]   ;;  %s560_s4 = inlined_call_operand.vmem [shape: bf16[2,64,8], index: 4, kind: output, shape index: {}]  }
   0x1 LB: > { %s404_s16 = sadd.s32 4294967295, %s490_s15   ;;  %p408_p0 = scmp.ge.s32.totalorder %s490_s15, 1  ;;  %s490_s15 = sphi %s517_s15, %s14_s15  }
   0x2   : > { %p172_p1 = scmp.lt.s32.totalorder %s490_s15, 3 }
   0x4   : > { %p173_p2 = pnand %p408_p0, %p172_p1 }
   0x5   : > { %p203_p3 = scmp.lt.s32.totalorder (!%p173_p2), %s404_s16, 1  ;;  %v415_v0 = vld [vmem:[%s557_s1] ss:$0 sm:$0xff] (!%p173_p2)  ;;  %vm328_vm0 = vcmask (!%p173_p2), 60416  }
   0x6   : > { %176 = sbr.rel (%p173_p2) target bundleno = 37 (0x25), region = 36  ;;  %v416_v11 = vld [vmem:[%s558_s2] ss:$0 sm:$0xff] (!%p173_p2) }
   0xd   : > { %s562_s16 = smov (!%p203_p3, %s404_s16), 1 }
   0xe   : > { %s525_s17 = sshll.u32 %s562_s16, 5 }
   0xf   : > { %s207_s20 = scalar_lea.vmem %s556_s0, %s525_s17  ;;  %s212_s23 = scalar_lea.vmem %s559_s3, %s525_s17 }
  0x10   : > { %v439_v1 = vld [vmem:[%s207_s20] sm:$0xff]   ;;  %v470_v3 = vld [vmem:[%s207_s20 + $0x8] sm:$0xff]   ;;  %v471_v9 = vld [vmem:[%s207_s20 + $0x10] sm:$0xff]   ;;  %s217_s30 = scalar_lea.vmem %s560_s4, %s525_s17 }
  0x11   : > { %v455_v2 = vld [vmem:[%s212_s23] sm:$0xff]   ;;  %v440_v4 = vunpack.c.l.bf16 %v439_v1  ;;  %v441_v6 = vunpack.c.h.bf16 %v439_v1  ;;  %v473_v8 = vld [vmem:[%s212_s23 + $0x8] sm:$0xff]   ;;  %v474_v10 = vld [vmem:[%s212_s23 + $0x10] sm:$0xff]   ;;  %v444_v12 = vunpack.c.l.bf16 %v470_v3  ;;  %v445_v14 = vunpack.c.h.bf16 %v470_v3 }
  0x12   : > { %v456_v5 = vunpack.c.l.bf16 %v455_v2  ;;  %v457_v7 = vunpack.c.h.bf16 %v455_v2  ;;  %v460_v13 = vunpack.c.l.bf16 %v473_v8  ;;  %v461_v15 = vunpack.c.h.bf16 %v473_v8  ;;  %v472_v16 = vld [vmem:[%s207_s20 + $0x18] sm:$0xff]  }
  0x13   : > { %v241_v17 = vmul.f32 %v440_v4, %v415_v0  ;;  %v242_v18 = vmul.f32 %v441_v6, %v415_v0  ;;  %v448_v19 = vunpack.c.l.bf16 %v471_v9  ;;  %v464_v20 = vunpack.c.l.bf16 %v474_v10  ;;  %v475_v21 = vld [vmem:[%s212_s23 + $0x18] sm:$0xff]  }
  0x14   : > { %v243_v22 = vmul.f32 %v444_v12, %v415_v0  ;;  %v244_v23 = vmul.f32 %v445_v14, %v415_v0  ;;  %v449_v24 = vunpack.c.h.bf16 %v471_v9  ;;  %v465_v25 = vunpack.c.h.bf16 %v474_v10 }
  0x15   : > { %v256_v26 = vadd.f32 %v416_v11, %v241_v17  ;;  %v257_v27 = vadd.f32 %v416_v11, %v242_v18  ;;  %v245_v28 = vmul.f32 %v448_v19, %v415_v0  ;;  %v452_v29 = vunpack.c.l.bf16 %v472_v16 }
  0x16   : > { %v258_v30 = vadd.f32 %v416_v11, %v243_v22  ;;  %v259_v31 = vadd.f32 %v416_v11, %v244_v23  ;;  %v246_v32 = vmul.f32 %v449_v24, %v415_v0  ;;  %v468_v33 = vunpack.c.l.bf16 %v475_v21 }
  0x17   : > { %v264_v34 = vmax.f32 %v256_v26, 0.0  ;;  %v265_v35 = vmax.f32 %v257_v27, 0.0  ;;  %v260_v36 = vadd.f32 %v416_v11, %v245_v28  ;;  %v247_v37 = vmul.f32 %v452_v29, %v415_v0 }
  0x18   : > { %v266_v38 = vmax.f32 %v258_v30, 0.0  ;;  %v267_v39 = vmax.f32 %v259_v31, 0.0  ;;  %v261_v40 = vadd.f32 %v416_v11, %v246_v32  ;;  %v453_v41 = vunpack.c.h.bf16 %v472_v16 }
  0x19   : > { %v288_v42 = vadd.f32 %v456_v5, %v264_v34  ;;  %v289_v43 = vadd.f32 %v457_v7, %v265_v35  ;;  %v268_v44 = vmax.f32 %v260_v36, 0.0  ;;  %v262_v45 = vadd.f32 %v416_v11, %v247_v37 }
  0x1a   : > { %v290_v46 = vadd.f32 %v460_v13, %v266_v38  ;;  %v291_v47 = vadd.f32 %v461_v15, %v267_v39  ;;  %v269_v48 = vmax.f32 %v261_v40, 0.0  ;;  %v248_v49 = vmul.f32 %v453_v41, %v415_v0 }
  0x1b   : > { %v430_v50 = vpack.c.bf16 %v288_v42, %v288_v42  ;;  %v431_v51 = vpack.c.bf16 %v289_v43, %v289_v43  ;;  %v292_v52 = vadd.f32 %v464_v20, %v268_v44  ;;  %v270_v53 = vmax.f32 %v262_v45, 0.0 }
  0x1c   : > { %v432_v54 = vpack.c.bf16 %v290_v46, %v290_v46  ;;  %v433_v55 = vpack.c.bf16 %v291_v47, %v291_v47  ;;  %v293_v56 = vadd.f32 %v465_v25, %v269_v48  ;;  %v263_v57 = vadd.f32 %v416_v11, %v248_v49 }
  0x1d   : > { %329 = vst.msk [vmem:[%s217_s30] sm:$0xf] %vm328_vm0, %v430_v50  ;;  %330 = vst.msk [vmem:[%s217_s30 + $0x4] sm:$0xf] %vm328_vm0, %v431_v51  ;;  %v434_v58 = vpack.c.bf16 %v292_v52, %v292_v52  ;;  %v294_v59 = vadd.f32 %v468_v33, %v270_v53  ;;  %v469_v60 = vunpack.c.h.bf16 %v475_v21 }
  0x1e   : > { %331 = vst.msk [vmem:[%s217_s30 + $0x8] sm:$0xf] %vm328_vm0, %v432_v54  ;;  %332 = vst.msk [vmem:[%s217_s30 + $0xc] sm:$0xf] %vm328_vm0, %v433_v55  ;;  %v435_v61 = vpack.c.bf16 %v293_v56, %v293_v56  ;;  %v271_v62 = vmax.f32 %v263_v57, 0.0 }
  0x1f   : > { %333 = vst.msk [vmem:[%s217_s30 + $0x10] sm:$0xf] %vm328_vm0, %v434_v58  ;;  %v436_v63 = vpack.c.bf16 %v294_v59, %v294_v59 }
  0x20   : > { %334 = vst.msk [vmem:[%s217_s30 + $0x14] sm:$0xf] %vm328_vm0, %v435_v61  ;;  %v295_v0 = vadd.f32 %v469_v60, %v271_v62 }
  0x21   : > { %335 = vst.msk [vmem:[%s217_s30 + $0x18] sm:$0xf] %vm328_vm0, %v436_v63 }
  0x22   : > { %v437_v1 = vpack.c.bf16 %v295_v0, %v295_v0 }
  0x24   : > { %336 = vst.msk [vmem:[%s217_s30 + $0x1c] sm:$0xf] %vm328_vm0, %v437_v1 }
  0x25 PF: > { %s14_s15 = sadd.s32 1, %s490_s15  }
  0x26   : > { %p11_p4 = scmp.ge.s32.totalorder %s14_s15, 4  }
  0x28   :  { %13 = sbr.rel (!%p11_p4) target bundleno = 1 (0x1), region = 69 }

// kernel: _downsample_impl.9
= control target key start
LH: loop header
LB: loop body
LE: loop exit
PB: predicated region body
PF: predicated region fallthrough
CT: control target
= control target key end

     0   :  { %s573_s12 = smov 0   ;;  %s634_s0 = inlined_call_operand.vmem [shape: bf16[2,64,4], index: 0, kind: input, shape index: {}]   ;;  %s635_s1 = inlined_call_operand.vmem [shape: bf16[4,8], index: 1, kind: input, shape index: {}]   ;;  %s636_s2 = inlined_call_operand.vmem [shape: bf16[2,64,8], index: 2, kind: output, shape index: {0}]   ;;  %s637_s3 = inlined_call_operand.vmem [shape: f32[2,2,8], index: 3, kind: output, shape index: {1}]  }
   0x1 LB: > { %s476_s13 = sadd.s32 4294967295, %s551_s12   ;;  %p480_p0 = scmp.ge.s32.totalorder %s551_s12, 1  ;;  %s551_s12 = sphi %s573_s12, %s14_s12  }
   0x2   : > { %p140_p1 = scmp.lt.s32.totalorder %s551_s12, 3 }
   0x4   : > { %p141_p2 = pnand %p480_p0, %p140_p1 }
   0x5   : > { %v191_v0 = vld [vmem:[%s635_s1] sm:$0x3] (!%p141_p2)  ;;  %vm225_vm0 = vcmask (!%p141_p2), 1041408   ;;  %p168_p3 = scmp.lt.s32.totalorder (!%p141_p2), %s476_s13, 1  ;;  %vm212_vm1 = vcmask (!%p141_p2), 31744   ;;  %vm326_vm2 = vcmask (!%p141_p2), 60416  }
   0x6   : > { %144 = sbr.rel (%p141_p2) target bundleno = 264 (0x108), region = 28  ;;  %531 = vmatprep.subr.msk.bf16.mxu0 (!%p141_p2), %vm225_vm0, %v191_v0  ;;  %v227_v1 = vsel (!%p141_p2), %vm225_vm0, %v191_v0, 0  ;;  %532 = vmatprep.subr.msk.bf16.mxu1 (!%p141_p2), %vm225_vm0, %v191_v0  ;;  %vm335_vm3 = vcmask (!%p141_p2), 64512   ;;  %vm386_vm4 = vcmask (!%p141_p2), 1040384   ;;  %vm388_vm5 = vcmask (!%p141_p2), 58368  }
   0x7   : > { %520 = vmatpush3.bf16.msra.mxu0 (!%p141_p2), %v227_v1  ;;  %530 = vmatpush3.bf16.msra.mxu1 (!%p141_p2), %v227_v1 }
   0xd   : > { %s639_s13 = smov (!%p168_p3, %s476_s13), 1 }
   0xe   : > { %s504_s16 = sshll.u32 %s639_s13, 5  ;;  %s485_s23 = sshll.u32 %s639_s13, 1 }
   0xf   : > { %s172_s19 = scalar_lea.vmem %s634_s0, %s504_s16  ;;  %s593_s22 = scalar_lea.vmem %s636_s2, %s504_s16 }
  0x10   : > { %v541_v2 = vld [vmem:[%s172_s19] sm:$0xff]   ;;  %v542_v3 = vld [vmem:[%s172_s19 + $0x8] sm:$0xff]   ;;  %v543_v4 = vld [vmem:[%s172_s19 + $0x10] sm:$0xff]   ;;  %s181_s26 = scalar_lea.vmem %s637_s3, %s485_s23 }
  0x11   : > { %521 = vmatprep.mubr.msk.bf16.mxu0 %vm212_vm1, %v541_v2  ;;  %v544_v5 = vld [vmem:[%s172_s19 + $0x18] sm:$0xff]   ;;  %525 = vmatprep.mubr.msk.bf16.mxu1 %vm212_vm1, %v543_v4 }
  0x12   : > { %522 = vmatmul.mubr.msk.bf16.vlgmr.msra.gmra.mrb[0].mxu0 %vm212_vm1, %v542_v3  ;;  %526 = vmatmul.mubr.msk.bf16.vlgmr.msra.gmra.mrb[0].mxu1 %vm212_vm1, %v544_v5 }
  0xe5   : > { %v523_v6 = vpop.f32.mrb[0].mxu0  ;;  %v527_v12 = vpop.f32.mrb[0].mxu1 }
  0xe6   : > { %v508_v7 = vpack.c.bf16 %v523_v6, %v523_v6  ;;  %v263_v8 = vpop.f32.mrb[1].mxu0  ;;  %v359_v13 = vmul.f32 %v523_v6, %v523_v6  ;;  %v279_v16 = vpop.f32.mrb[1].mxu1  ;;  %v339_v22 = vsel %vm335_vm3, %v523_v6, 0.0  ;;  %v512_v24 = vpack.c.bf16 %v527_v12, %v527_v12 }
  0xe7   : > { %v506_v9 = vpack.c.bf16 %v263_v8, %v263_v8  ;;  %v357_v10 = vmul.f32 %v263_v8, %v263_v8  ;;  %v524_v11 = vpop.f32.mrb[2].mxu0  ;;  %v336_v17 = vsel %vm335_vm3, %v263_v8, 0.0  ;;  %v528_v21 = vpop.f32.mrb[2].mxu1  ;;  %v510_v29 = vpack.c.bf16 %v279_v16, %v279_v16 }
  0xe8   : > { %329 = vst.msk [vmem:[%s593_s22 + $0x8] sm:$0xf] %vm326_vm2, %v508_v7  ;;  %v509_v14 = vpack.c.bf16 %v524_v11, %v524_v11  ;;  %v266_v15 = vpop.f32.mrb[3].mxu0  ;;  %v282_v25 = vpop.f32.mrb[3].mxu1  ;;  %v360_v27 = vmul.f32 %v524_v11, %v524_v11  ;;  %333 = vst.msk [vmem:[%s593_s22 + $0x18] sm:$0xf] %vm326_vm2, %v512_v24  ;;  %v361_v32 = vmul.f32 %v279_v16, %v279_v16 }
  0xe9   : > { %327 = vst.msk [vmem:[%s593_s22] sm:$0xf] %vm326_vm2, %v506_v9  ;;  %v507_v18 = vpack.c.bf16 %v266_v15, %v266_v15  ;;  %v337_v19 = vsel %vm335_vm3, %v266_v15, 0.0  ;;  %v358_v20 = vmul.f32 %v266_v15, %v266_v15  ;;  %v365_v26 = vsel %vm335_vm3, %v357_v10, 0.0  ;;  %331 = vst.msk [vmem:[%s593_s22 + $0x10] sm:$0xf] %vm326_vm2, %v510_v29 }
  0xea   : > { %330 = vst.msk [vmem:[%s593_s22 + $0xc] sm:$0xf] %vm326_vm2, %v509_v14  ;;  %v338_v23 = vadd.f32 %v337_v19, %v336_v17  ;;  %v513_v33 = vpack.c.bf16 %v528_v21, %v528_v21  ;;  %v368_v34 = vsel %vm335_vm3, %v359_v13, 0.0  ;;  %v341_v35 = vsel %vm335_vm3, %v524_v11, 0.0 }
  0xeb   : > { %328 = vst.msk [vmem:[%s593_s22 + $0x4] sm:$0xf] %vm326_vm2, %v507_v18  ;;  %v366_v28 = vsel %vm335_vm3, %v358_v20, 0.0  ;;  %v343_v36 = vsel %vm335_vm3, %v279_v16, 0.0  ;;  %v511_v37 = vpack.c.bf16 %v282_v25, %v282_v25  ;;  %v370_v40 = vsel %vm335_vm3, %v360_v27, 0.0 }
  0xec   : > { %v340_v30 = vadd.f32 %v339_v22, %v338_v23  ;;  %v367_v31 = vadd.f32 %v366_v28, %v365_v26  ;;  %334 = vst.msk [vmem:[%s593_s22 + $0x1c] sm:$0xf] %vm326_vm2, %v513_v33  ;;  %v372_v41 = vsel %vm335_vm3, %v361_v32, 0.0  ;;  %v362_v42 = vmul.f32 %v282_v25, %v282_v25 }
  0xed   : > { %332 = vst.msk [vmem:[%s593_s22 + $0x14] sm:$0xf] %vm326_vm2, %v511_v37  ;;  %v363_v45 = vmul.f32 %v527_v12, %v527_v12  ;;  %v345_v46 = vsel %vm335_vm3, %v282_v25, 0.0  ;;  %v347_v49 = vsel %vm335_vm3, %v527_v12, 0.0  ;;  %v364_v50 = vmul.f32 %v528_v21, %v528_v21 }
  0xee   : > { %v369_v38 = vadd.f32 %v368_v34, %v367_v31  ;;  %v342_v39 = vadd.f32 %v341_v35, %v340_v30  ;;  %v374_v51 = vsel %vm335_vm3, %v362_v42, 0.0  ;;  %v349_v55 = vsel %vm335_vm3, %v528_v21, 0.0 }
  0xef   : > { %v376_v54 = vsel %vm335_vm3, %v363_v45, 0.0  ;;  %v378_v58 = vsel %vm335_vm3, %v364_v50, 0.0 }
  0xf0   : > { %v344_v43 = vadd.f32 %v343_v36, %v342_v39  ;;  %v371_v44 = vadd.f32 %v370_v40, %v369_v38 }
  0xf2   : > { %v373_v47 = vadd.f32 %v372_v41, %v371_v44  ;;  %v346_v48 = vadd.f32 %v345_v46, %v344_v43 }
  0xf4   : > { %v348_v52 = vadd.f32 %v347_v49, %v346_v48  ;;  %v375_v53 = vadd.f32 %v374_v51, %v373_v47 }
  0xf6   : > { %v350_v56 = vadd.f32 %v349_v55, %v348_v52  ;;  %v377_v57 = vadd.f32 %v376_v54, %v375_v53 }
  0xf8   : > { %v351_v59 = vrot.slane %v350_v56, 4  ;;  %v379_v60 = vadd.f32 %v378_v58, %v377_v57 }
  0xfa   : > { %v352_v61 = vadd.f32 %v351_v59, %v350_v56  ;;  %v380_v62 = vrot.slane %v379_v60, 4 }
  0xfc   : > { %v353_v63 = vrot.slane %v352_v61, 2  ;;  %v381_v0 = vadd.f32 %v380_v62, %v379_v60 }
  0xfe   : > { %v354_v1 = vadd.f32 %v353_v63, %v352_v61  ;;  %v382_v2 = vrot.slane %v381_v0, 2 }
 0x100   : > { %v355_v3 = vrot.slane %v354_v1, 1  ;;  %v383_v4 = vadd.f32 %v382_v2, %v381_v0 }
 0x102   : > { %v384_v5 = vrot.slane %v383_v4, 1  ;;  %v356_v6 = vadd.f32 %v355_v3, %v354_v1 }
 0x104   : > { %v385_v7 = vadd.f32 %v384_v5, %v383_v4 }
 0x106   : > { %v387_v8 = vsel %vm386_vm4, %v356_v6, %v385_v7 }
 0x107   : > { %389 = vst.msk [vmem:[%s181_s26] sm:$0x3] %vm388_vm5, %v387_v8 }
 0x108 PF: > { %s14_s12 = sadd.s32 1, %s551_s12  }
 0x109   : > { %p11_p4 = scmp.ge.s32.totalorder %s14_s12, 4  }
 0x10b   :  { %13 = sbr.rel (!%p11_p4) target bundleno = 1 (0x1), region = 70 }

// kernel: _downsample_impl.13
= control target key start
LH: loop header
LB: loop body
LE: loop exit
PB: predicated region body
PF: predicated region fallthrough
CT: control target
= control target key end

     0   :  { %7 = vsyncpa [#allocation3], 0  ;;  %s536_s0 = inlined_call_operand.vmem [shape: bf16[2,16,8], index: 0, kind: input, shape index: {}]   ;;  %s537_s1 = inlined_call_operand.vmem [shape: bf16[8,8], index: 1, kind: input, shape index: {}]   ;;  %s538_s2 = inlined_call_operand.hbm [shape: f32[2,16,8], index: 2, kind: output, shape index: {}]  }
   0x1   :  { %9 = vsyncpa [#allocation3 + $0x1], 0  ;;  %s430_s9 = smov 0   ;;  %s432_s10 = smov 0  }
   0x2   :  { %s434_s11 = smov 0   ;;  %s436_s12 = smov 0  }
   0x3 LB: > { %s451_s13 = sadd.s32 4294967295, %s408_s12   ;;  %s278_s14 = sadd.s32 4294967294, %s408_s12   ;;  %s408_s12 = sphi %s436_s12, %s544_s12   ;;  %s404_s11 = sphi %s434_s11, %s543_s11   ;;  %s400_s10 = sphi %s432_s10, %s542_s10   ;;  %s396_s9 = sphi %s430_s9, %s541_s9  }
   0x4   : > { %s455_s15 = sadd.s32 1, %s408_s12   ;;  %s69_s16 = sadd.s32 1, %s404_s11 }
   0x5   : > { %s66_s17 = ssub.s32 %s408_s12, %s455_s15  ;;  %p79_p0 = scmp.ne.s32.totalorder %s404_s11, %s400_s10 }
   0x6   : > { %p67_p1 = scmp.eq.s32.totalorder %s66_s17, 0  ;;  %p80_p2 = scmp.eq.s32.totalorder %s451_s13, 1 }
   0x7   : > { %p85_p3 = scmp.ne.s32.totalorder %s400_s10, %s396_s9  ;;  %p86_p4 = scmp.eq.s32.totalorder %s278_s14, 1 }
   0x8   : > { %s466_s18 = scalar_select %p67_p1, %s404_s11, %s69_s16  }
   0x9   : > { %p468_p5 = por %p80_p2, %p79_p0  ;;  %p472_p6 = por %p86_p4, %p85_p3 }
   0xa   : > { %p281_p7 = scmp.ge.s32.totalorder %s408_s12, 1  ;;  %p115_p8 = scmp.lt.s32.totalorder %s408_s12, 3 }
   0xc   : > { %p116_p9 = pnand %p281_p7, %p115_p8 }
   0xd   : > { %v145_v0 = vld [vmem:[%s537_s1] sm:$0xf] (!%p116_p9)  ;;  %vm155_vm0 = vcmask (!%p116_p9), 1043456   ;;  %p137_p10 = scmp.lt.s32.totalorder (!%p116_p9), %s451_s13, 1  ;;  %v410_v1 = vmov (!%p116_p9), 0.0   ;;  %vm411_vm1 = vmmov (!%p116_p9), 0  }
   0xe   : > { %119 = sbr.rel (%p116_p9) target bundleno = 255 (0xff), region = 28  ;;  %296 = vmatprep.subr.bf16.mxu0 (!%p116_p9), %v410_v1  ;;  %v157_v2 = vsel (!%p116_p9), %vm155_vm0, %v145_v0, 0  ;;  %298 = vmatprep.mubr.msk.bf16.mxu0 (!%p116_p9), %vm411_vm1, %v410_v1  ;;  %vm151_vm2 = vcmask (!%p116_p9), 64512   ;;  %s134_s28 = sand.u32 (!%p116_p9), 1, %s400_s10  }
   0xf   : > { %297 = vmatpush3.bf16.msra.mxu0 (!%p116_p9), %v157_v2  ;;  %s282_s29 = sshll.u32 (!%p116_p9), %s134_s28, 4  ;;  %s293_s4 = sshll.u32 (!%p116_p9), %s451_s13, 8 }
  0x10   : > { %s136_s30 = scalar_lea.vmem (!%p116_p9), [#allocation2], %s282_s29  ;;  %s493_s7 = scalar_lea.hbm (!%p116_p9), %s538_s2, %s293_s4 }
  0x11   : > { %s216_s3 = sshll.u32 (!%p116_p9), %s136_s30, 4  ;;  %s495_s8 = scalar_lea.sflag (!%p116_p9), [#allocation3], %s134_s28  ;;  %s488_s3 = int_to_ptr.vmem [resolvable:$true] %s216_s3 }
  0x12   : > { %s346_s14 = scalar_lea.vmem (!%p116_p9), %s488_s3, 256 }
  0x13   : > { %p347_p11 = scmp.ne.s32.totalorder (!%p116_p9), %s488_s3, %s346_s14 }
  0x15   : > { %s138_s23 = scalar_select %p137_p10, %s451_s13, 1 }
  0x16   : > { %p348_p12 = pnand %p347_p11, %p468_p5  ;;  %s412_s13 = smov [#allocation2]  }
  0x17   : > { %s292_s24 = sshll.u32 %s138_s23, 3  ;;  %s350_s16 = sshll.u32 %s412_s13, 4  ;;  %s351_s16 = int_to_ptr.vmem [resolvable:$false] %s350_s16 }
  0x18   : > { %s141_s27 = scalar_lea.vmem %s536_s0, %s292_s24  ;;  %p349_p13 = pneg %p348_p12 }
  0x19   : > { %v345_v3 = vld [vmem:[%s141_s27] sm:$0xff]   ;;  %s352_s17 = scalar_lea.vmem %s351_s16, 512  ;;  %p353_p0 = scmp.lt.s32.totalorder %s488_s3, %s351_s16 }
  0x1a   : > { %299 = vmatmul.mubr.msk.bf16.vlgmr.msra.gmra.mrb[0].mxu0 %vm151_vm2, %v345_v3  ;;  %p354_p1 = scmp.lt.s32.totalorder %s352_s17, %s346_s14 }
  0x1c   : > { %p355_p2 = por %p354_p1, %p353_p0 }
  0x1e   : > { %p356_p3 = pnand %p355_p2, %p349_p13 }
  0xed   : > { %v193_v4 = vpop.f32.mrb[0].mxu0 }
  0xee   : > { %200 = vst.msk [vmem:[%s136_s30] sm:$0xff] %vm151_vm2, %v193_v4  ;;  %v300_v5 = vpop.f32.mrb[1].mxu0 }
  0xef   : > { %v196_v6 = vpop.f32.mrb[2].mxu0 }
  0xf0   : > { %201 = vst.msk [vmem:[%s136_s30 + $0x8] sm:$0xff] %vm151_vm2, %v196_v6  ;;  %v301_v7 = vpop.f32.mrb[3].mxu0 }
  0xf1   : > { %359 = shalt.err (!%p356_p3)
}
  0xf2   : > { %s360_s21 = scalar_lea.hbm %s493_s7, 256  ;;  %s364_s24 = scalar_lea.hbm %s538_s2, 512 }
  0xf3   : > { %p361_p4 = scmp.ne.s32.totalorder %s493_s7, %s360_s21  ;;  %p365_p9 = scmp.lt.u32.totalorder %s493_s7, %s538_s2 }
  0xf4   : > { %p366_p10 = scmp.lt.u32.totalorder %s364_s24, %s360_s21  ;;  %p368_p12 = scmp.lt.u32.totalorder %s360_s21, %s493_s7 }
  0xf5   : > { %p362_p7 = pnand %p361_p4, %p468_p5 }
  0xf6   : > { %p367_p11 = por %p366_p10, %p365_p9 }
  0xf7   : > { %p363_p8 = pneg %p362_p7 }
  0xf8   : > { %p369_p13 = por %p368_p12, %p367_p11 }
  0xfa   : > { %p370_p0 = pnand %p369_p13, %p363_p8 }
  0xfc   : > { %373 = shalt.err (!%p370_p0)
}
  0xfd   : > { %s413_s27 = smov 128   ;;  %s414_s28 = smov 8  }
  0xfe   : > { %302 = dma.vmem_to_hbm [thread:$0]  (%p468_p5), %s488_s3, 256, %s493_s7, %s495_s8, %s413_s27, %s413_s27, %s414_s28  }
  0xff PF: > { %p308_p1 = scmp.ge.s32.totalorder %s408_s12, 2  ;;  %s231_s29 = sand.u32 1, %s396_s9  }
 0x100   : > { %s232_s30 = scalar_lea.sflag [#allocation3], %s231_s29 }
 0x101   : > { %p305_p2 = pnand %p308_p1, %p472_p6 }
 0x103   : > { %391 = dma.done.wait (!%p305_p2), %s232_s30, 256  }
 0x104   : > { %393 = vsyncadd (!%p305_p2), %s232_s30, 4294967040  ;;  %p12_p3 = scmp.ge.s32.totalorder %s455_s15, 4   ;;  %s541_s9 = smov %s400_s10 }
 0x105   : > { %s542_s10 = smov %s404_s11  ;;  %s543_s11 = smov %s466_s18 }
 0x106   : > { %s544_s12 = smov %s455_s15  ;;  %14 = sbr.rel (!%p12_p3) target bundleno = 3 (0x3), region = 63 }
 0x10d   :  { %237 = vsyncpa [#allocation3], 1 }
 0x10e   :  { %239 = vsyncpa [#allocation3 + $0x1], 1 }

// kernel: _downsample_impl.11
= control target key start
LH: loop header
LB: loop body
LE: loop exit
PB: predicated region body
PF: predicated region fallthrough
CT: control target
= control target key end

     0   :  { %s2323_s12 = smov 0   ;;  %s2871_s0 = inlined_call_operand.vmem [shape: bf16[2,10,10,8], index: 0, kind: input, shape index: {}]   ;;  %s2872_s1 = inlined_call_operand.vmem [shape: bf16[3,3,8,8], index: 1, kind: input, shape index: {}]   ;;  %s2873_s2 = inlined_call_operand.vmem [shape: bf16[2,64,8], index: 2, kind: output, shape index: {0}]   ;;  %s2874_s3 = inlined_call_operand.vmem [shape: f32[2,2,8], index: 3, kind: output, shape index: {1}]  }
   0x1 LB: > { %s1867_s13 = sadd.s32 4294967295, %s2301_s12   ;;  %p1871_p0 = scmp.ge.s32.totalorder %s2301_s12, 1  ;;  %s2301_s12 = sphi %s2323_s12, %s14_s12  }
   0x2   : > { %p140_p1 = scmp.lt.s32.totalorder %s2301_s12, 3 }
   0x4   : > { %p141_p2 = pnand %p1871_p0, %p140_p1 }
   0x5   : > { %v1876_v0 = vld [vmem:[%s2872_s1 + $0x4] sm:$0xf] (!%p141_p2)  ;;  %vm342_vm0 = vcmask (!%p141_p2), 1043456   ;;  %v2337_v1 = vld [vmem:[%s2872_s1 + $0x10] sm:$0xf] (!%p141_p2)  ;;  %p168_p3 = scmp.lt.s32.totalorder (!%p141_p2), %s1867_s13, 1 }
   0x6   : > { %144 = sbr.rel (%p141_p2) target bundleno = 354 (0x162), region = 28  ;;  %2264 = vmatprep.subr.msk.bf16.mxu1 (!%p141_p2), %vm342_vm0, %v1876_v0  ;;  %2268 = vmatprep.subr.msk.bf16.mxu0 (!%p141_p2), %vm342_vm0, %v2337_v1  ;;  %v344_v2 = vsel (!%p141_p2), %vm342_vm0, %v1876_v0, 0  ;;  %v2345_v3 = vsel (!%p141_p2), %vm342_vm0, %v2337_v1, 0  ;;  %v191_v4 = vld [vmem:[%s2872_s1] sm:$0xf] (!%p141_p2)  ;;  %vm329_vm3 = vcmask (!%p141_p2), 64512  }
   0x7   : > { %2109 = vmatpush3.bf16.msra.mxu1 (!%p141_p2), %v344_v2  ;;  %2149 = vmatpush3.bf16.msra.mxu0 (!%p141_p2), %v2345_v3  ;;  %v1968_v5 = vld [vmem:[%s2872_s1 + $0x14] sm:$0xf] (!%p141_p2)  ;;  %vm200_vm1 = vsmask.f32 (!%p141_p2), 3328  ;;  %vm201_vm2 = vsmask.f32 (!%p141_p2), 7440 }
   0x8   : > { %2265 = vmatprep.subr.msk.bf16.mxu1 (!%p141_p2), %vm342_vm0, %v191_v4  ;;  %2270 = vmatprep.subr.msk.bf16.mxu0 (!%p141_p2), %vm342_vm0, %v1968_v5  ;;  %v2384_v17 = vsel (!%p141_p2), %vm342_vm0, %v191_v4, 0  ;;  %v2397_v31 = vld [vmem:[%s2872_s1 + $0x18] sm:$0xf] (!%p141_p2)  ;;  %vm2401_vm4 = vmor (!%p141_p2), %vm200_vm1, %vm201_vm2  ;;  %v2413_v42 = vsel (!%p141_p2), %vm342_vm0, %v1968_v5, 0  ;;  %vm535_vm5 = vcmask (!%p141_p2), 1042432   ;;  %vm536_vm6 = vcmask (!%p141_p2), 1046532  }
   0x9   : > { %v2420_v47 = vsel (!%p141_p2), %vm342_vm0, %v2397_v31, 0  ;;  %vm2512_vm7 = vmor (!%p141_p2), %vm535_vm5, %vm536_vm6  ;;  %vm1718_vm8 = vcmask (!%p141_p2), 60416   ;;  %vm1777_vm9 = vcmask (!%p141_p2), 1040384   ;;  %vm1779_vm10 = vcmask (!%p141_p2), 58368  }
   0xd   : > { %s2880_s13 = smov (!%p168_p3, %s1867_s13), 1 }
   0xe   : > { %s2274_s22 = smul.u32 80, %s2880_s13  ;;  %s2054_s9 = sshll.u32 %s2880_s13, 5 }
   0xf   : > { %s2830_s14 = scalar_lea.vmem %s2873_s2, %s2054_s9  ;;  %s1875_s15 = sshll.u32 %s2880_s13, 1 }
  0x10   : > { %s2362_s25 = scalar_lea.vmem %s2871_s0, %s2274_s22  ;;  %s181_s18 = scalar_lea.vmem %s2874_s3, %s1875_s15 }
  0x11   : > { %v2365_v6 = vld [vmem:[%s2362_s25] sm:$0xf]  ;;  %v2368_v7 = vld [vmem:[%s2362_s25 + $0x8] sm:$0xf]  ;;  %v2371_v8 = vld [vmem:[%s2362_s25 + $0x4] sm:$0x1] }
  0x12   : > { %v2374_v9 = vld [vmem:[%s2362_s25 + $0xc] sm:$0x1]  ;;  %v204_v10 = vshrl.u32 %v2365_v6, 16  ;;  %v207_v11 = vshll.u32 %v2365_v6, 16  ;;  %v213_v12 = vshll.u32 %v2371_v8, 16  ;;  %v218_v13 = vshrl.u32 %v2368_v7, 16 }
  0x13   : > { %v221_v14 = vshll.u32 %v2368_v7, 16  ;;  %v227_v15 = vshll.u32 %v2374_v9, 16  ;;  %v1927_v16 = vld [vmem:[%s2362_s25 + $0x8] sm:$0xf]  ;;  %v2387_v22 = vld [vmem:[%s2362_s25 + $0xc] sm:$0x1] }
  0x14   : > { %v206_v18 = vrot.slane %v204_v10, 4  ;;  %v209_v19 = vrot.slane %v207_v11, 5  ;;  %v215_v20 = vrot.slane %v213_v12, 5  ;;  %v220_v21 = vrot.slane %v218_v13, 4  ;;  %v1929_v25 = vld [vmem:[%s2362_s25 + $0x10] sm:$0xf] }
  0x15   : > { %v223_v23 = vrot.slane %v221_v14, 5  ;;  %v229_v24 = vrot.slane %v227_v15, 5  ;;  %v2391_v26 = vld [vmem:[%s2362_s25 + $0x14] sm:$0x1]  ;;  %v808_v28 = vshrl.u32 %v1927_v16, 16  ;;  %v811_v29 = vshll.u32 %v1927_v16, 16 }
  0x16   : > { %v210_v27 = vor.u32 %v209_v19, %v206_v18  ;;  %v817_v30 = vshll.u32 %v2387_v22, 16  ;;  %v822_v34 = vshrl.u32 %v1929_v25, 16  ;;  %v825_v35 = vshll.u32 %v1929_v25, 16  ;;  %v2407_v37 = vld [vmem:[%s2362_s25 + $0x10] sm:$0xf] }
  0x17   : > { %v224_v33 = vor.u32 %v223_v23, %v220_v21  ;;  %v831_v36 = vshll.u32 %v2391_v26, 16  ;;  %v810_v39 = vrot.slane %v808_v28, 4  ;;  %v813_v40 = vrot.slane %v811_v29, 5  ;;  %v2410_v41 = vld [vmem:[%s2362_s25 + $0x18] sm:$0xf] }
  0x18   : > { %v211_v38 = vrot.slane %v210_v27, 4  ;;  %v824_v44 = vrot.slane %v822_v34, 4  ;;  %v827_v45 = vrot.slane %v825_v35, 5  ;;  %v2416_v46 = vld [vmem:[%s2362_s25 + $0x14] sm:$0x1]  ;;  %v819_v50 = vrot.slane %v817_v30, 5 }
  0x19   : > { %v225_v43 = vrot.slane %v224_v33, 4  ;;  %v814_v49 = vor.u32 %v813_v40, %v810_v39  ;;  %v833_v51 = vrot.slane %v831_v36, 5  ;;  %v2427_v54 = vld [vmem:[%s2362_s25 + $0x1c] sm:$0x1]  ;;  %v232_v55 = vshrl.u32 %v2407_v37, 16 }
  0x1a   : > { %v216_v48 = vsel %vm2401_vm4, %v211_v38, %v215_v20  ;;  %v828_v53 = vor.u32 %v827_v45, %v824_v44  ;;  %v235_v56 = vshll.u32 %v2407_v37, 16  ;;  %v241_v59 = vshll.u32 %v2416_v46, 16  ;;  %v1931_v2 = vld [vmem:[%s2362_s25 + $0x18] sm:$0xf]  ;;  %v2441_v12 = vld [vmem:[%s2362_s25 + $0x1c] sm:$0x1] }
  0x1b   : > { %v230_v52 = vsel %vm2401_vm4, %v225_v43, %v229_v24  ;;  %v815_v58 = vrot.slane %v814_v49, 4  ;;  %v246_v60 = vshrl.u32 %v2410_v41, 16  ;;  %v234_v62 = vrot.slane %v232_v55, 4  ;;  %v1933_v18 = vld [vmem:[%s2362_s25 + $0x20] sm:$0xf] }
  0x1c   : > { %v1877_v57 = vcombine.low %v216_v48, %v230_v52  ;;  %v829_v61 = vrot.slane %v828_v53, 4  ;;  %v237_v63 = vrot.slane %v235_v56, 5  ;;  %v249_v0 = vshll.u32 %v2410_v41, 16  ;;  %v2447_v19 = vld [vmem:[%s2362_s25 + $0x24] sm:$0x1] }
  0x1d   : > { %v820_v4 = vsel %vm2401_vm4, %v815_v58, %v819_v50  ;;  %v1047_v5 = vrot.slane %v2387_v22, 5  ;;  %v248_v10 = vrot.slane %v246_v60, 4  ;;  %v255_v11 = vshll.u32 %v2427_v54, 16  ;;  %v2454_v36 = vld [vmem:[%s2362_s25 + $0x20] sm:$0xf] }
  0x1e   : > { %2110 = vmatprep.mubr.msk.bf16.mxu1 %vm329_vm3, %v1877_v57  ;;  %v834_v13 = vsel %vm2401_vm4, %v829_v61, %v833_v51  ;;  %v238_v14 = vor.u32 %v237_v63, %v234_v62  ;;  %v243_v15 = vrot.slane %v241_v59, 5  ;;  %v251_v16 = vrot.slane %v249_v0, 5  ;;  %v2459_v44 = vld [vmem:[%s2362_s25 + $0x24] sm:$0x1]  ;;  %v2463_v51 = vld [vmem:[%s2362_s25 + $0x28] sm:$0xf] }
  0x1f   : > { %v1944_v20 = vcombine.low %v820_v4, %v834_v13  ;;  %v1051_v21 = vrot.slane %v2391_v26, 5  ;;  %v257_v23 = vrot.slane %v255_v11, 5  ;;  %v836_v24 = vshrl.u32 %v1931_v2, 16  ;;  %v2469_v56 = vld [vmem:[%s2362_s25 + $0x2c] sm:$0x1] }
  0x20   : > { %v239_v25 = vrot.slane %v238_v14, 4  ;;  %v252_v27 = vor.u32 %v251_v16, %v248_v10  ;;  %v839_v28 = vshll.u32 %v1931_v2, 16  ;;  %v845_v29 = vshll.u32 %v2441_v12, 16  ;;  %v2475_v62 = vld [vmem:[%s2362_s25 + $0x30] sm:$0xf] }
  0x21   : > { %2150 = vmatprep.mubr.msk.bf16.mxu0 %vm329_vm3, %v1944_v20  ;;  %v838_v30 = vrot.slane %v836_v24, 4  ;;  %v850_v33 = vshrl.u32 %v1933_v18, 16  ;;  %v853_v34 = vshll.u32 %v1933_v18, 16  ;;  %v859_v35 = vshll.u32 %v2447_v19, 16  ;;  %v2480_v63 = vld [vmem:[%s2872_s1 + $0x8] sm:$0xf] }
  0x22   : > { %v244_v38 = vsel %vm2401_vm4, %v239_v25, %v243_v15  ;;  %v253_v39 = vrot.slane %v252_v27, 4  ;;  %v841_v40 = vrot.slane %v839_v28, 5  ;;  %v847_v43 = vrot.slane %v845_v29, 5  ;;  %v2485_v11 = vld [vmem:[%s2362_s25 + $0x38] sm:$0xf] }
  0x23   : > { %v852_v45 = vrot.slane %v850_v33, 4  ;;  %v855_v48 = vrot.slane %v853_v34, 5  ;;  %v861_v49 = vrot.slane %v859_v35, 5  ;;  %v1055_v50 = vrot.slane %v2441_v12, 5  ;;  %v2490_v18 = vld [vmem:[%s2362_s25 + $0x34] sm:$0x1] }
  0x24   : > { %v258_v52 = vsel %vm2401_vm4, %v253_v39, %v257_v23  ;;  %v842_v53 = vor.u32 %v841_v40, %v838_v30  ;;  %v1059_v55 = vrot.slane %v2447_v19, 5  ;;  %v260_v57 = vshrl.u32 %v2454_v36, 16  ;;  %v2496_v25 = vld [vmem:[%s2362_s25 + $0x3c] sm:$0x1]  ;;  %v1952_v34 = vld [vmem:[%s2362_s25 + $0x8] sm:$0xe] }
  0x25   : > { %v1878_v58 = vcombine.low %v244_v38, %v258_v52  ;;  %v856_v59 = vor.u32 %v855_v48, %v852_v45  ;;  %v263_v60 = vshll.u32 %v2454_v36, 16  ;;  %v269_v61 = vshll.u32 %v2459_v44, 16  ;;  %v2565_v19 = vld [vmem:[%s2362_s25 + $0x44] sm:$0x1] }
  0x26   : > { %v843_v0 = vrot.slane %v842_v53, 4  ;;  %v262_v2 = vrot.slane %v260_v57, 4  ;;  %v274_v4 = vshrl.u32 %v2463_v51, 16  ;;  %v277_v10 = vshll.u32 %v2463_v51, 16  ;;  %v1955_v57 = vld [vmem:[%s2362_s25 + $0x20] sm:$0xe] }
  0x27   : > { %2111 = vmatmul.mubr.msk.bf16.vlgmr.msra.gmra.mrb[0].mxu1 %vm329_vm3, %v1878_v58  ;;  %v857_v13 = vrot.slane %v856_v59, 4  ;;  %v265_v14 = vrot.slane %v263_v60, 5  ;;  %v271_v15 = vrot.slane %v269_v61, 5  ;;  %v283_v16 = vshll.u32 %v2469_v56, 16 }
  0x28   : > { %2119 = vmatpush3.bf16.msra.mxu1 %v2384_v17  ;;  %v848_v20 = vsel %vm2401_vm4, %v843_v0, %v847_v43  ;;  %v276_v23 = vrot.slane %v274_v4, 4  ;;  %v279_v24 = vrot.slane %v277_v10, 5  ;;  %v288_v27 = vshrl.u32 %v2475_v62, 16  ;;  %v1953_v17 = vld [vmem:[%s2362_s25 + $0x10] sm:$0xe] }
  0x29   : > { %v862_v28 = vsel %vm2401_vm4, %v857_v13, %v861_v49  ;;  %v266_v29 = vor.u32 %v265_v14, %v262_v2  ;;  %v285_v30 = vrot.slane %v283_v16, 5  ;;  %v291_v33 = vshll.u32 %v2475_v62, 16  ;;  %2266 = vmatprep.subr.msk.bf16.mxu1 %vm342_vm0, %v2480_v63  ;;  %v1954_v43 = vld [vmem:[%s2362_s25 + $0x18] sm:$0xe]  ;;  %v1956_v0 = vld [vmem:[%s2362_s25 + $0x28] sm:$0xe] }
  0x2a   : > { %v1945_v35 = vcombine.low %v848_v20, %v862_v28  ;;  %v280_v38 = vor.u32 %v279_v24, %v276_v23  ;;  %v290_v39 = vrot.slane %v288_v27, 4  ;;  %v297_v40 = vshll.u32 %v2490_v18, 16 }
  0x2b   : > { %v267_v45 = vrot.slane %v266_v29, 4  ;;  %v293_v48 = vrot.slane %v291_v33, 5  ;;  %v302_v49 = vshrl.u32 %v2485_v11, 16  ;;  %v305_v52 = vshll.u32 %v2485_v11, 16  ;;  %v2535_v29 = vld [vmem:[%s2362_s25 + $0x34] sm:$0x1] }
  0x2c   : > { %2151 = vmatmul.mubr.msk.bf16.vlgmr.msra.gmra.mrb[0].mxu0 %vm329_vm3, %v1945_v35  ;;  %v281_v58 = vrot.slane %v280_v38, 4  ;;  %v299_v59 = vrot.slane %v297_v40, 5  ;;  %v311_v60 = vshll.u32 %v2496_v25, 16  ;;  %v1960_v61 = vrot.slane %v1952_v34, 9  ;;  %v1958_v38 = vld [vmem:[%s2362_s25 + $0x38] sm:$0xe] }
  0x2d   : > { %2159 = vmatpush3.bf16.msra.mxu0 %v2413_v42  ;;  %v272_v2 = vsel %vm2401_vm4, %v267_v45, %v271_v15  ;;  %v294_v4 = vor.u32 %v293_v48, %v290_v39  ;;  %v304_v10 = vrot.slane %v302_v49, 4  ;;  %v307_v13 = vrot.slane %v305_v52, 5  ;;  %v2532_v42 = vld [vmem:[%s2362_s25 + $0x2c] sm:$0x1]  ;;  %v1959_v45 = vld [vmem:[%s2362_s25 + $0x40] sm:$0xe] }
  0x2e   : > { %v286_v14 = vsel %vm2401_vm4, %v281_v58, %v285_v30  ;;  %v313_v16 = vrot.slane %v311_v60, 5  ;;  %v1048_v20 = vsel %vm2512_vm7, %v1960_v61, %v1047_v5  ;;  %v1961_v23 = vrot.slane %v1953_v17, 9  ;;  %2271 = vmatprep.subr.msk.bf16.mxu0 %vm342_vm0, %v2397_v31  ;;  %v1957_v30 = vld [vmem:[%s2362_s25 + $0x30] sm:$0xe]  ;;  %v2543_v31 = vld [vmem:[%s2362_s25 + $0x3c] sm:$0x1] }
  0x2f   : > { %v1879_v15 = vcombine.low %v272_v2, %v286_v14  ;;  %v295_v24 = vrot.slane %v294_v4, 4  ;;  %v308_v27 = vor.u32 %v307_v13, %v304_v10  ;;  %v1962_v28 = vrot.slane %v1954_v43, 9  ;;  %v2574_v48 = vld [vmem:[%s2872_s1 + $0xc] sm:$0xf]  ;;  %v512_v58 = vld [vmem:[%s2362_s25 + $0x8] sm:$0xe] }
  0x30   : > { %v1052_v22 = vsel %vm2512_vm7, %v1961_v23, %v1051_v21  ;;  %v1963_v5 = vrot.slane %v1955_v57, 9  ;;  %v1964_v33 = vrot.slane %v1956_v0, 9  ;;  %v1063_v39 = vrot.slane %v2532_v42, 5  ;;  %v514_v4 = vld [vmem:[%s2362_s25 + $0x18] sm:$0xe] }
  0x31   : > { %2114 = vmatprep.mubr.msk.bf16.mxu1 %vm329_vm3, %v1879_v15  ;;  %v300_v34 = vsel %vm2401_vm4, %v295_v24, %v299_v59  ;;  %v309_v17 = vrot.slane %v308_v27, 4  ;;  %v1969_v35 = vcombine.low %v1048_v20, %v1052_v22  ;;  %v1056_v26 = vsel %vm2512_vm7, %v1962_v28, %v1055_v50  ;;  %v513_v59 = vld [vmem:[%s2362_s25 + $0x10] sm:$0xe]  ;;  %v515_v20 = vld [vmem:[%s2362_s25 + $0x20] sm:$0xe] }
  0x32   : > { %v1060_v21 = vsel %vm2512_vm7, %v1963_v5, %v1059_v55  ;;  %v1965_v40 = vrot.slane %v1957_v30, 9  ;;  %v1067_v43 = vrot.slane %v2535_v29, 5  ;;  %v1885_v50 = vcombine.low %v2365_v6, %v2368_v7  ;;  %v2010_v55 = vld [vmem:[%s2872_s1 + $0x1c] sm:$0xf]  ;;  %v511_v7 = vld [vmem:[%s2362_s25] sm:$0xe] }
  0x33   : > { %v314_v12 = vsel %vm2401_vm4, %v309_v17, %v313_v16  ;;  %2160 = vmatprep.mubr.msk.bf16.mxu0 %vm329_vm3, %v1969_v35  ;;  %v1970_v52 = vcombine.low %v1056_v26, %v1060_v21  ;;  %v1064_v57 = vsel %vm2512_vm7, %v1964_v33, %v1063_v39  ;;  %v540_v60 = vrot.slane %v2371_v8, 5  ;;  %v1994_v5 = vld [vmem:[%s2362_s25 + $0x10] sm:$0xf]  ;;  %v516_v17 = vld [vmem:[%s2362_s25 + $0x28] sm:$0xe] }
  0x34   : > { %v1880_v49 = vcombine.low %v300_v34, %v314_v12  ;;  %v1068_v6 = vsel %vm2512_vm7, %v1965_v40, %v1067_v43  ;;  %v1966_v0 = vrot.slane %v1958_v38, 9  ;;  %v1071_v2 = vrot.slane %v2543_v31, 5  ;;  %v517_v35 = vld [vmem:[%s2362_s25 + $0x30] sm:$0xe]  ;;  %v1996_v26 = vld [vmem:[%s2362_s25 + $0x18] sm:$0xf] }
  0x35   : > { %v1971_v61 = vcombine.low %v1064_v57, %v1068_v6  ;;  %v544_v10 = vrot.slane %v2374_v9, 5  ;;  %v548_v13 = vrot.slane %v2416_v46, 5  ;;  %v1967_v14 = vrot.slane %v1959_v45, 9  ;;  %v2287_v38 = vld [vmem:[%s2362_s25 + $0x10] ss:$8 sps:$4 sm:$0xff]  }
  0x36   : > { %2115 = vmatmul.mubr.msk.bf16.gmra.mrb[4].mxu1 %vm329_vm3, %v1880_v49  ;;  %v1075_v16 = vrot.slane %v2565_v19, 5  ;;  %v552_v23 = vrot.slane %v2427_v54, 5  ;;  %v1893_v8 = vrot.slane %v511_v7, 9  ;;  %v1894_v15 = vrot.slane %v512_v58, 9  ;;  %v2637_v21 = vld [vmem:[%s2362_s25 + $0x38] sm:$0xe] }
  0x37   : > { %2120 = vmatprep.mubr.msk.bf16.mxu1 %vm329_vm3, %v1885_v50  ;;  %v1895_v24 = vrot.slane %v513_v59, 9  ;;  %v597_v9 = vsel %vm342_vm0, %v2480_v63, 0  ;;  %v2597_v46 = vsel %vm342_vm0, %v2010_v55, 0  ;;  %v1896_v27 = vrot.slane %v514_v4, 9  ;;  %v2640_v39 = vld [vmem:[%s2362_s25 + $0x14] sm:$0x1] }
  0x38   : > { %2161 = vmatmul.mubr.msk.bf16.vlgmr.msra.gmra.mrb[0].mxu0 %vm329_vm3, %v1970_v52  ;;  %v2601_v54 = vsel %vm342_vm0, %v2574_v48, 0  ;;  %v1072_v28 = vsel %vm2512_vm7, %v1966_v0, %v1071_v2  ;;  %v1076_v63 = vsel %vm2512_vm7, %v1967_v14, %v1075_v16  ;;  %v1897_v30 = vrot.slane %v515_v20, 9  ;;  %v2000_v52 = vld [vmem:[%s2362_s25 + $0x28] sm:$0xf]  ;;  %v2659_v59 = vld [vmem:[%s2362_s25 + $0x1c] sm:$0x1] }
  0x39   : > { %2169 = vmatpush3.bf16.msra.mxu0 %v2420_v47  ;;  %2164 = vmatprep.mubr.msk.bf16.mxu0 %vm329_vm3, %v1971_v61  ;;  %v556_v22 = vrot.slane %v2459_v44, 5  ;;  %v1886_v33 = vcombine.low %v2407_v37, %v2410_v41  ;;  %v2616_v47 = vsel %vm2512_vm7, %v1893_v8, %v540_v60  ;;  %v2620_v34 = vsel %vm2512_vm7, %v1894_v15, %v544_v10  ;;  %v2667_v2 = vld [vmem:[%s2362_s25 + $0x24] sm:$0x1]  ;;  %v2002_v20 = vld [vmem:[%s2362_s25 + $0x30] sm:$0xf] }
  0x3a   : > { %2272 = vmatprep.subr.msk.bf16.mxu0 %vm342_vm0, %v2010_v55  ;;  %v1887_v44 = vcombine.low %v2454_v36, %v2463_v51  ;;  %v2630_v37 = vsel %vm2512_vm7, %v1895_v24, %v548_v13  ;;  %v2634_v41 = vsel %vm2512_vm7, %v1896_v27, %v552_v23  ;;  %v1972_v40 = vcombine.low %v1072_v28, %v1076_v63  ;;  %v1998_v36 = vld [vmem:[%s2362_s25 + $0x20] sm:$0xf]  ;;  %v2678_v15 = vld [vmem:[%s2362_s25 + $0x2c] sm:$0x1]  ;;  %v2289_v27 = vld [vmem:[%s2362_s25 + $0x30] ss:$8 sps:$4 sm:$0xff]  }
  0x3b   : > { %v1888_v43 = vcombine.low %v2475_v62, %v2485_v11  ;;  %v1315_v12 = vshrl.u32 %v1994_v5, 16  ;;  %v1318_v50 = vshll.u32 %v1994_v5, 16  ;;  %v1902_v51 = vcombine.low %v2616_v47, %v2620_v34  ;;  %v2288_v23 = vld [vmem:[%s2362_s25 + $0x20] ss:$8 sps:$4 sm:$0xff]   ;;  %v2004_v5 = vld [vmem:[%s2362_s25 + $0x38] sm:$0xf] }
  0x3c   : > { %v2649_v45 = vsel %vm2512_vm7, %v1897_v30, %v556_v22  ;;  %v1898_v55 = vrot.slane %v516_v17, 9  ;;  %v1329_v49 = vshrl.u32 %v1996_v26, 16  ;;  %v1903_v62 = vcombine.low %v2630_v37, %v2634_v41  ;;  %v2689_v17 = vld [vmem:[%s2362_s25 + $0x34] sm:$0x1] }
  0x3d   : > { %v560_v11 = vrot.slane %v2469_v56, 5  ;;  %v1317_v57 = vrot.slane %v1315_v12, 4  ;;  %v1320_v6 = vrot.slane %v1318_v50, 5  ;;  %v1899_v7 = vrot.slane %v517_v35, 9  ;;  %v2006_v12 = vld [vmem:[%s2362_s25 + $0x40] sm:$0xf] }
  0x3e   : > { %2121 = vmatmul.mubr.msk.bf16.vlgmr.msra.gmra.mrb[0].mxu1 %vm329_vm3, %v1886_v33  ;;  %v564_v58 = vrot.slane %v2490_v18, 5  ;;  %v1331_v60 = vrot.slane %v1329_v49, 4  ;;  %v1332_v61 = vshll.u32 %v1996_v26, 16  ;;  %v1900_v56 = vrot.slane %v2637_v21, 9  ;;  %v2699_v21 = vld [vmem:[%s2362_s25 + $0x3c] sm:$0x1] }
  0x3f   : > { %2129 = vmatpush3.bf16.msra.mxu1 %v597_v9  ;;  %2124 = vmatprep.mubr.msk.bf16.mxu1 %vm329_vm3, %v1887_v44  ;;  %v1324_v0 = vshll.u32 %v2640_v39, 16  ;;  %v1343_v18 = vshrl.u32 %v1998_v36, 16  ;;  %v1346_v4 = vshll.u32 %v1998_v36, 16  ;;  %v1321_v10 = vor.u32 %v1320_v6, %v1317_v57  ;;  %v2008_v6 = vld [vmem:[%s2362_s25 + $0x48] sm:$0xf] }
  0x40   : > { %2165 = vmatmul.mubr.msk.bf16.gmra.mrb[4].mxu0 %vm329_vm3, %v1972_v40  ;;  %2267 = vmatprep.subr.msk.bf16.mxu1 %vm342_vm0, %v2574_v48  ;;  %v1334_v13 = vrot.slane %v1332_v61, 5  ;;  %v1357_v14 = vshrl.u32 %v2000_v52, 16  ;;  %v1360_v16 = vshll.u32 %v2000_v52, 16  ;;  %v2674_v48 = vsel %vm2512_vm7, %v1898_v55, %v560_v11 }
  0x41   : > { %2170 = vmatprep.mubr.msk.bf16.mxu0 %vm329_vm3, %v2287_v38  ;;  %v1338_v8 = vshll.u32 %v2659_v59, 16  ;;  %v1345_v24 = vrot.slane %v1343_v18, 4  ;;  %v1348_v9 = vrot.slane %v1346_v4, 5  ;;  %v568_v28 = vrot.slane %v2496_v25, 5  ;;  %v2696_v25 = vld [vmem:[%s2872_s1 + $0x20] sm:$0xf] }
  0x42   : > { %v1335_v63 = vor.u32 %v1334_v13, %v1331_v60  ;;  %v1359_v30 = vrot.slane %v1357_v14, 4  ;;  %v1362_v22 = vrot.slane %v1360_v16, 5  ;;  %v2685_v33 = vsel %vm2512_vm7, %v1899_v7, %v564_v58  ;;  %v2724_v13 = vld [vmem:[%s2362_s25 + $0x44] sm:$0x1] }
  0x43   : > { %v1326_v47 = vrot.slane %v1324_v0, 5  ;;  %v1352_v34 = vshll.u32 %v2667_v2, 16  ;;  %v1371_v35 = vshrl.u32 %v2002_v20, 16  ;;  %v1904_v26 = vcombine.low %v2649_v45, %v2674_v48 }
  0x44   : > { %v1322_v44 = vrot.slane %v1321_v10, 4  ;;  %v1349_v38 = vor.u32 %v1348_v9, %v1345_v24  ;;  %v1374_v40 = vshll.u32 %v2002_v20, 16  ;;  %v1336_v50 = vrot.slane %v1335_v63, 4  ;;  %v2727_v20 = vld [vmem:[%s2362_s25 + $0x4c] sm:$0x1] }
  0x45   : > { %v1340_v36 = vrot.slane %v1338_v8, 5  ;;  %v1373_v55 = vrot.slane %v1371_v35, 4  ;;  %v1385_v49 = vshrl.u32 %v2004_v5, 16  ;;  %v2706_v45 = vsel %vm2512_vm7, %v1900_v56, %v568_v28  ;;  %v2290_v8 = vld [vmem:[%s2362_s25 + $0x40] ss:$8 sps:$4 sm:$0xff]  }
  0x46   : > { %2125 = vmatmul.mubr.msk.bf16.gmra.mrb[4].mxu1 %vm329_vm3, %v1888_v43  ;;  %v1363_v52 = vor.u32 %v1362_v22, %v1359_v30  ;;  %v1366_v11 = vshll.u32 %v2678_v15, 16  ;;  %v1376_v57 = vrot.slane %v1374_v40, 5  ;;  %v2711_v7 = vrot.slane %v1352_v34, 5 }
  0x47   : > { %2130 = vmatprep.mubr.msk.bf16.mxu1 %vm329_vm3, %v1902_v51  ;;  %v1380_v43 = vshll.u32 %v2689_v17, 16  ;;  %v1387_v58 = vrot.slane %v1385_v49, 4  ;;  %v1388_v60 = vshll.u32 %v2004_v5, 16  ;;  %v1327_v51 = vsel %vm2401_vm4, %v1322_v44, %v1326_v47  ;;  %v1937_v49 = vld [vmem:[%s2362_s25 + $0x30] sm:$0xf] }
  0x48   : > { %2171 = vmatmul.mubr.msk.bf16.vlgmr.msra.gmra.mrb[0].mxu0 %vm329_vm3, %v2288_v23  ;;  %v1350_v61 = vrot.slane %v1349_v38, 4  ;;  %v1377_v56 = vor.u32 %v1376_v57, %v1373_v55  ;;  %v1399_v0 = vshrl.u32 %v2006_v12, 16  ;;  %v1341_v18 = vsel %vm2401_vm4, %v1336_v50, %v1340_v36  ;;  %v2019_v38 = vld [vmem:[%s2362_s25 + $0x10] sm:$0xe]  ;;  %v2020_v50 = vld [vmem:[%s2362_s25 + $0x18] sm:$0xe] }
  0x49   : > { %2179 = vmatpush3.bf16.msra.mxu0 %v2597_v46  ;;  %2174 = vmatprep.mubr.msk.bf16.mxu0 %vm329_vm3, %v2289_v27  ;;  %v1390_v4 = vrot.slane %v1388_v60, 5  ;;  %v1394_v10 = vshll.u32 %v2699_v21, 16  ;;  %v1402_v46 = vshll.u32 %v2006_v12, 16  ;;  %v1364_v14 = vrot.slane %v1363_v52, 4  ;;  %v2291_v57 = vld [vmem:[%s2362_s25 + $0x8] ss:$8 sps:$4 sm:$0xff]  }
  0x4a   : > { %2273 = vmatprep.subr.msk.bf16.mxu0 %vm342_vm0, %v2696_v25  ;;  %v1368_v16 = vrot.slane %v1366_v11, 5  ;;  %v1401_v23 = vrot.slane %v1399_v0, 4  ;;  %v1413_v48 = vshrl.u32 %v2008_v6, 16  ;;  %v1382_v24 = vrot.slane %v1380_v43, 5 }
  0x4b   : > { %v1391_v9 = vor.u32 %v1390_v4, %v1387_v58  ;;  %v1404_v27 = vrot.slane %v1402_v46, 5  ;;  %v1416_v28 = vshll.u32 %v2008_v6, 16  ;;  %v2011_v63 = vcombine.low %v1327_v51, %v1341_v18 }
  0x4c   : > { %v1378_v30 = vrot.slane %v1377_v56, 4  ;;  %v1408_v22 = vshll.u32 %v2724_v13, 16  ;;  %v1415_v5 = vrot.slane %v1413_v48, 4  ;;  %v1396_v34 = vrot.slane %v1394_v10, 5 }
  0x4d   : > { %v1392_v47 = vrot.slane %v1391_v9, 4  ;;  %v1418_v35 = vrot.slane %v1416_v28, 5  ;;  %v1422_v44 = vshll.u32 %v2727_v20, 16  ;;  %v1905_v40 = vcombine.low %v2685_v33, %v2706_v45  ;;  %v1941_v28 = vld [vmem:[%s2362_s25 + $0x40] sm:$0xf] }
  0x4e   : > { %2131 = vmatmul.mubr.msk.bf16.vlgmr.msra.gmra.mrb[0].mxu1 %vm329_vm3, %v1903_v62  ;;  %v1405_v12 = vor.u32 %v1404_v27, %v1401_v23  ;;  %v1355_v37 = vsel %vm2401_vm4, %v1350_v61, %v2711_v7  ;;  %v1369_v41 = vsel %vm2401_vm4, %v1364_v14, %v1368_v16  ;;  %v1935_v62 = vld [vmem:[%s2362_s25 + $0x28] sm:$0xf]  ;;  %v1383_v33 = vsel %vm2401_vm4, %v1378_v30, %v1382_v24  ;;  %v1939_v27 = vld [vmem:[%s2362_s25 + $0x38] sm:$0xf] }
  0x4f   : > { %2139 = vmatpush3.bf16.msra.mxu1 %v2601_v54  ;;  %2134 = vmatprep.mubr.msk.bf16.mxu1 %vm329_vm3, %v1904_v26  ;;  %v1419_v54 = vor.u32 %v1418_v35, %v1415_v5  ;;  %v1410_v26 = vrot.slane %v1408_v22, 5  ;;  %v2027_v36 = vrot.slane %v2019_v38, 9  ;;  %v1554_v55 = vrot.slane %v2640_v39, 5  ;;  %v2293_v38 = vld [vmem:[%s2362_s25 + $0x28] ss:$8 sps:$4 sm:$0xff]  }
  0x50   : > { %2175 = vmatmul.mubr.msk.bf16.gmra.mrb[4].mxu0 %vm329_vm3, %v2290_v8  ;;  %2269 = vmatprep.subr.msk.bf16.mxu1 %vm342_vm0, %v2337_v1  ;;  %v1397_v45 = vsel %vm2401_vm4, %v1392_v47, %v1396_v34  ;;  %v1424_v52 = vrot.slane %v1422_v44, 5  ;;  %v2028_v11 = vrot.slane %v2020_v50, 9  ;;  %v1558_v1 = vrot.slane %v2659_v59, 5  ;;  %v2021_v59 = vld [vmem:[%s2362_s25 + $0x20] sm:$0xe] }
  0x51   : > { %2180 = vmatprep.mubr.msk.bf16.mxu0 %vm329_vm3, %v2011_v63  ;;  %v1406_v6 = vrot.slane %v1405_v12, 4  ;;  %v1420_v7 = vrot.slane %v1419_v54, 4  ;;  %v864_v43 = vshrl.u32 %v1935_v62, 16  ;;  %v867_v58 = vshll.u32 %v1935_v62, 16  ;;  %v2292_v63 = vld [vmem:[%s2362_s25 + $0x18] ss:$8 sps:$4 sm:$0xff]  }
  0x52   : > { %v2012_v60 = vcombine.low %v1355_v37, %v1369_v41  ;;  %v878_v51 = vshrl.u32 %v1937_v49, 16  ;;  %v881_v61 = vshll.u32 %v1937_v49, 16  ;;  %v2013_v56 = vcombine.low %v1383_v33, %v1397_v45  ;;  %v2023_v44 = vld [vmem:[%s2362_s25 + $0x30] sm:$0xe] }
  0x53   : > { %v866_v39 = vrot.slane %v864_v43, 4  ;;  %v869_v0 = vrot.slane %v867_v58, 5  ;;  %v1611_v18 = vsel %vm342_vm0, %v2696_v25, 0  ;;  %v1411_v46 = vsel %vm2401_vm4, %v1406_v6, %v1410_v26  ;;  %v2022_v25 = vld [vmem:[%s2362_s25 + $0x28] sm:$0xe] }
  0x54   : > { %v880_v4 = vrot.slane %v878_v51, 4  ;;  %v883_v10 = vrot.slane %v881_v61, 5  ;;  %v1425_v14 = vsel %vm2401_vm4, %v1420_v7, %v1424_v52  ;;  %v1555_v16 = vsel %vm2512_vm7, %v2027_v36, %v1554_v55  ;;  %v2025_v6 = vld [vmem:[%s2362_s25 + $0x40] sm:$0xe]  ;;  %v2026_v7 = vld [vmem:[%s2362_s25 + $0x48] sm:$0xe] }
  0x55   : > { %v1559_v23 = vsel %vm2512_vm7, %v2028_v11, %v1558_v1  ;;  %v870_v48 = vor.u32 %v869_v0, %v866_v39  ;;  %v873_v8 = vshll.u32 %v2532_v42, 16  ;;  %v887_v9 = vshll.u32 %v2535_v29, 16  ;;  %v2024_v42 = vld [vmem:[%s2362_s25 + $0x38] sm:$0xe] }
  0x56   : > { %2135 = vmatmul.mubr.msk.bf16.gmra.mrb[4].mxu1 %vm329_vm3, %v1905_v40  ;;  %v884_v24 = vor.u32 %v883_v10, %v880_v4  ;;  %v2029_v30 = vrot.slane %v2021_v59, 9  ;;  %v1562_v22 = vrot.slane %v2667_v2, 5  ;;  %v2014_v5 = vcombine.low %v1411_v46, %v1425_v14 }
  0x57   : > { %2140 = vmatprep.mubr.msk.bf16.mxu1 %vm329_vm3, %v2291_v57  ;;  %v2036_v47 = vcombine.low %v1555_v16, %v1559_v23  ;;  %v2030_v34 = vrot.slane %v2022_v25, 9  ;;  %v1566_v35 = vrot.slane %v2678_v15, 5  ;;  %v892_v40 = vshrl.u32 %v1939_v27, 16  ;;  %v2294_v57 = vld [vmem:[%s2362_s25 + $0x38] ss:$8 sps:$4 sm:$0xff]  }
  0x58   : > { %2181 = vmatmul.mubr.msk.bf16.vlgmr.msra.gmra.mrb[0].mxu0 %vm329_vm3, %v2012_v60  ;;  %v895_v12 = vshll.u32 %v1939_v27, 16  ;;  %v906_v29 = vshrl.u32 %v1941_v28, 16  ;;  %v909_v50 = vshll.u32 %v1941_v28, 16  ;;  %v871_v37 = vrot.slane %v870_v48, 4 }
  0x59   : > { %2189 = vmatpush3.bf16.msra.mxu0 %v1611_v18  ;;  %2184 = vmatprep.mubr.msk.bf16.mxu0 %vm329_vm3, %v2013_v56  ;;  %v875_v41 = vrot.slane %v873_v8, 5  ;;  %v885_v54 = vrot.slane %v884_v24, 4  ;;  %v889_v62 = vrot.slane %v887_v9, 5  ;;  %v2031_v33 = vrot.slane %v2023_v44, 9 }
  0x5a   : > { %v1570_v26 = vrot.slane %v2689_v17, 5  ;;  %v2032_v2 = vrot.slane %v2024_v42, 9  ;;  %v1574_v36 = vrot.slane %v2699_v21, 5  ;;  %v894_v15 = vrot.slane %v892_v40, 4 }
  0x5b   : > { %v897_v55 = vrot.slane %v895_v12, 5  ;;  %v908_v49 = vrot.slane %v906_v29, 4  ;;  %v911_v45 = vrot.slane %v909_v50, 5  ;;  %v901_v52 = vshll.u32 %v2543_v31, 16 }
  0x5c   : > { %v876_v17 = vsel %vm2401_vm4, %v871_v37, %v875_v41  ;;  %v890_v21 = vsel %vm2401_vm4, %v885_v54, %v889_v62  ;;  %v1567_v11 = vsel %vm2512_vm7, %v2030_v34, %v1566_v35  ;;  %v1571_v1 = vsel %vm2512_vm7, %v2031_v33, %v1570_v26 }
  0x5d   : > { %v1575_v31 = vsel %vm2512_vm7, %v2032_v2, %v1574_v36  ;;  %v915_v43 = vshll.u32 %v2565_v19, 16  ;;  %v1946_v58 = vcombine.low %v876_v17, %v890_v21  ;;  %v898_v60 = vor.u32 %v897_v55, %v894_v15 }
  0x5e   : > { %2141 = vmatmul.mubr.msk.bf16.vlgmr.msra.gmra.mrb[0].mxu1 %vm329_vm3, %v2292_v63  ;;  %v912_v51 = vor.u32 %v911_v45, %v908_v49  ;;  %v2038_v56 = vcombine.low %v1571_v1, %v1575_v31  ;;  %v2033_v39 = vrot.slane %v2025_v6, 9  ;;  %v1578_v0 = vrot.slane %v2724_v13, 5 }
  0x5f   : > { %2199 = vmatpush3.bf16.msra.mxu1 %v2345_v3  ;;  %2144 = vmatprep.mubr.msk.bf16.mxu1 %vm329_vm3, %v2293_v38  ;;  %v1563_v3 = vsel %vm2512_vm7, %v2029_v30, %v1562_v22  ;;  %v2034_v18 = vrot.slane %v2026_v7, 9  ;;  %v1582_v59 = vrot.slane %v2727_v20, 5  ;;  %v903_v4 = vrot.slane %v901_v52, 5 }
  0x60   : > { %2185 = vmatmul.mubr.msk.bf16.gmra.mrb[4].mxu0 %vm329_vm3, %v2014_v5  ;;  %v2037_v61 = vcombine.low %v1563_v3, %v1567_v11  ;;  %v917_v10 = vrot.slane %v915_v43, 5  ;;  %v899_v46 = vrot.slane %v898_v60, 4  ;;  %v913_v19 = vrot.slane %v912_v51, 4 }
  0x61   : > { %2190 = vmatprep.mubr.msk.bf16.mxu0 %vm329_vm3, %v2036_v47  ;;  %v1579_v14 = vsel %vm2512_vm7, %v2033_v39, %v1578_v0  ;;  %v1583_v13 = vsel %vm2512_vm7, %v2034_v18, %v1582_v59 }
  0x62   : > { %v904_v20 = vsel %vm2401_vm4, %v899_v46, %v903_v4  ;;  %v918_v16 = vsel %vm2401_vm4, %v913_v19, %v917_v10  ;;  %v2039_v23 = vcombine.low %v1579_v14, %v1583_v13 }
  0x63   : > { %v1947_v25 = vcombine.low %v904_v20, %v918_v16 }
  0x66   : > { %2145 = vmatmul.mubr.msk.bf16.gmra.mrb[4].mxu1 %vm329_vm3, %v2294_v57 }
  0x67   : > { %2154 = vmatprep.mubr.msk.bf16.mxu1 %vm329_vm3, %v1946_v58 }
  0x68   : > { %2191 = vmatmul.mubr.msk.bf16.vlgmr.msra.gmra.mrb[0].mxu0 %vm329_vm3, %v2037_v61 }
  0x69   : > { %2194 = vmatprep.mubr.msk.bf16.mxu0 %vm329_vm3, %v2038_v56 }
  0x70   : > { %2195 = vmatmul.mubr.msk.bf16.gmra.mrb[4].mxu0 %vm329_vm3, %v2039_v23 }
  0x72   : > { %2155 = vmatmul.mubr.msk.bf16.vlgmr.msra.gmra.mrb[4].mxu1 %vm329_vm3, %v1947_v25 }
 0x131   : > { %v2142_v48 = vpop.f32.mrb[0].mxu1 }
 0x132   : > { %v752_v8 = vpop.f32.mrb[1].mxu1 }
 0x133   : > { %v2143_v24 = vpop.f32.mrb[2].mxu1 }
 0x134   : > { %v755_v9 = vpop.f32.mrb[3].mxu1 }
 0x13b   : > { %v2192_v27 = vpop.f32.mrb[0].mxu0 }
 0x13c   : > { %v2200_v53 = vadd.f32 %v2192_v27, %v2142_v48  ;;  %v1647_v28 = vpop.f32.mrb[1].mxu0 }
 0x13d   : > { %v2201_v32 = vadd.f32 %v1647_v28, %v752_v8  ;;  %v2193_v63 = vpop.f32.mrb[2].mxu0 }
 0x13e   : > { %v2057_v30 = vpack.c.bf16 %v2200_v53, %v2200_v53  ;;  %v2202_v22 = vadd.f32 %v2193_v63, %v2143_v24  ;;  %v1650_v5 = vpop.f32.mrb[3].mxu0  ;;  %v1750_v44 = vmul.f32 %v2200_v53, %v2200_v53  ;;  %v1730_v37 = vsel %vm329_vm3, %v2200_v53, 0.0 }
 0x13f   : > { %v2055_v47 = vpack.c.bf16 %v2201_v32, %v2201_v32  ;;  %v1748_v34 = vmul.f32 %v2201_v32, %v2201_v32  ;;  %v2203_v35 = vadd.f32 %v1650_v5, %v755_v9  ;;  %v1727_v38 = vsel %vm329_vm3, %v2201_v32, 0.0 }
 0x140   : > { %1721 = vst.msk [vmem:[%s2830_s14 + $0x8] sm:$0xf] %vm1718_vm8, %v2057_v30  ;;  %v2058_v42 = vpack.c.bf16 %v2202_v22, %v2202_v22  ;;  %v1751_v54 = vmul.f32 %v2202_v22, %v2202_v22  ;;  %v1759_v15 = vsel %vm329_vm3, %v1750_v44, 0.0  ;;  %v1732_v55 = vsel %vm329_vm3, %v2202_v22, 0.0 }
 0x141   : > { %1719 = vst.msk [vmem:[%s2830_s14] sm:$0xf] %vm1718_vm8, %v2055_v47  ;;  %v2056_v40 = vpack.c.bf16 %v2203_v35, %v2203_v35  ;;  %v1728_v12 = vsel %vm329_vm3, %v2203_v35, 0.0  ;;  %v1749_v29 = vmul.f32 %v2203_v35, %v2203_v35  ;;  %v1756_v41 = vsel %vm329_vm3, %v1748_v34, 0.0 }
 0x142   : > { %1722 = vst.msk [vmem:[%s2830_s14 + $0xc] sm:$0xf] %vm1718_vm8, %v2058_v42  ;;  %v1729_v50 = vadd.f32 %v1728_v12, %v1727_v38  ;;  %v1761_v1 = vsel %vm329_vm3, %v1751_v54, 0.0 }
 0x143   : > { %1720 = vst.msk [vmem:[%s2830_s14 + $0x4] sm:$0xf] %vm1718_vm8, %v2056_v40  ;;  %v1757_v62 = vsel %vm329_vm3, %v1749_v29, 0.0  ;;  %v2196_v33 = vpop.f32.mrb[4].mxu0 }
 0x144   : > { %v1731_v26 = vadd.f32 %v1730_v37, %v1729_v50  ;;  %v1758_v2 = vadd.f32 %v1757_v62, %v1756_v41  ;;  %v1663_v36 = vpop.f32.mrb[5].mxu0 }
 0x145   : > { %v2156_v49 = vpop.f32.mrb[4].mxu1  ;;  %v2197_v45 = vpop.f32.mrb[6].mxu0 }
 0x146   : > { %v1760_v52 = vadd.f32 %v1759_v15, %v1758_v2  ;;  %v2204_v17 = vadd.f32 %v2196_v33, %v2156_v49  ;;  %v998_v21 = vpop.f32.mrb[5].mxu1  ;;  %v1733_v3 = vadd.f32 %v1732_v55, %v1731_v26  ;;  %v1666_v11 = vpop.f32.mrb[7].mxu0 }
 0x147   : > { %v2205_v31 = vadd.f32 %v1663_v36, %v998_v21  ;;  %v2157_v57 = vpop.f32.mrb[6].mxu1 }
 0x148   : > { %v2061_v6 = vpack.c.bf16 %v2204_v17, %v2204_v17  ;;  %v1762_v7 = vadd.f32 %v1761_v1, %v1760_v52  ;;  %v1001_v43 = vpop.f32.mrb[7].mxu1  ;;  %v2206_v61 = vadd.f32 %v2197_v45, %v2157_v57  ;;  %v1754_v0 = vmul.f32 %v2204_v17, %v2204_v17 }
 0x149   : > { %v2059_v58 = vpack.c.bf16 %v2205_v31, %v2205_v31  ;;  %v1734_v60 = vsel %vm329_vm3, %v2205_v31, 0.0  ;;  %v1752_v51 = vmul.f32 %v2205_v31, %v2205_v31  ;;  %v2207_v39 = vadd.f32 %v1666_v11, %v1001_v43 }
 0x14a   : > { %1725 = vst.msk [vmem:[%s2830_s14 + $0x18] sm:$0xf] %vm1718_vm8, %v2061_v6  ;;  %v1735_v56 = vadd.f32 %v1734_v60, %v1733_v3  ;;  %v2062_v59 = vpack.c.bf16 %v2206_v61, %v2206_v61  ;;  %v1738_v13 = vsel %vm329_vm3, %v2204_v17, 0.0  ;;  %v1755_v20 = vmul.f32 %v2206_v61, %v2206_v61 }
 0x14b   : > { %1723 = vst.msk [vmem:[%s2830_s14 + $0x10] sm:$0xf] %vm1718_vm8, %v2059_v58  ;;  %v1763_v18 = vsel %vm329_vm3, %v1752_v51, 0.0  ;;  %v2060_v10 = vpack.c.bf16 %v2207_v39, %v2207_v39  ;;  %v1736_v46 = vsel %vm329_vm3, %v2207_v39, 0.0  ;;  %v1753_v19 = vmul.f32 %v2207_v39, %v2207_v39 }
 0x14c   : > { %v1764_v4 = vadd.f32 %v1763_v18, %v1762_v7  ;;  %1726 = vst.msk [vmem:[%s2830_s14 + $0x1c] sm:$0xf] %vm1718_vm8, %v2062_v59  ;;  %v1737_v14 = vadd.f32 %v1736_v46, %v1735_v56  ;;  %v1767_v48 = vsel %vm329_vm3, %v1754_v0, 0.0  ;;  %v1740_v8 = vsel %vm329_vm3, %v2206_v61, 0.0 }
 0x14d   : > { %1724 = vst.msk [vmem:[%s2830_s14 + $0x14] sm:$0xf] %vm1718_vm8, %v2060_v10  ;;  %v1765_v16 = vsel %vm329_vm3, %v1753_v19, 0.0  ;;  %v1769_v27 = vsel %vm329_vm3, %v1755_v20, 0.0 }
 0x14e   : > { %v1739_v23 = vadd.f32 %v1738_v13, %v1737_v14  ;;  %v1766_v25 = vadd.f32 %v1765_v16, %v1764_v4 }
 0x150   : > { %v1741_v24 = vadd.f32 %v1740_v8, %v1739_v23  ;;  %v1768_v9 = vadd.f32 %v1767_v48, %v1766_v25 }
 0x152   : > { %v1742_v53 = vrot.slane %v1741_v24, 4  ;;  %v1770_v28 = vadd.f32 %v1769_v27, %v1768_v9 }
 0x154   : > { %v1743_v32 = vadd.f32 %v1742_v53, %v1741_v24  ;;  %v1771_v63 = vrot.slane %v1770_v28, 4 }
 0x156   : > { %v1744_v30 = vrot.slane %v1743_v32, 2  ;;  %v1772_v22 = vadd.f32 %v1771_v63, %v1770_v28 }
 0x158   : > { %v1745_v5 = vadd.f32 %v1744_v30, %v1743_v32  ;;  %v1773_v47 = vrot.slane %v1772_v22, 2 }
 0x15a   : > { %v1746_v34 = vrot.slane %v1745_v5, 1  ;;  %v1774_v35 = vadd.f32 %v1773_v47, %v1772_v22 }
 0x15c   : > { %v1775_v44 = vrot.slane %v1774_v35, 1  ;;  %v1747_v42 = vadd.f32 %v1746_v34, %v1745_v5 }
 0x15e   : > { %v1776_v38 = vadd.f32 %v1775_v44, %v1774_v35 }
 0x160   : > { %v1778_v40 = vsel %vm1777_vm9, %v1747_v42, %v1776_v38 }
 0x161   : > { %1780 = vst.msk [vmem:[%s181_s18] sm:$0x3] %vm1779_vm10, %v1778_v40 }
 0x162 PF: > { %s14_s12 = sadd.s32 1, %s2301_s12  }
 0x163   : > { %p11_p4 = scmp.ge.s32.totalorder %s14_s12, 4  }
 0x165   :  { %13 = sbr.rel (!%p11_p4) target bundleno = 1 (0x1), region = 80 }

</bundles_post_ra>
